<compile_context>
chip_gen: v5e
topology: v5e:2x2
jax: 0.10.0
libtpu: 0.0.40
codegen_flags: <defaults>
</compile_context>

<pallas_src>
import jax
import jax.numpy as jnp
from jax.experimental import pallas as pl
from jax.experimental.pallas import tpu as pltpu

D_IN, D_H1, D_H2, D_OUT = 1024, 512, 256, 40
D_OUT_PAD = 128            # lane-dense padded width of the final layer
BN_EPS = 1e-5


def _mlp_kernel(x_ref,
                w1_ref, b1_ref,
                w2_ref, b2_ref,
                w3_ref, b3_ref,
                o_ref):
    # Layer 1: Linear(1024->512, no bias) with BN1 scale folded into W1.
    # x streams in its native dtype; cast the tile to bf16 for the MXU,
    # accumulate in f32, then fused +shift, ReLU, bf16 cast (dropout = id).
    x = x_ref[...].astype(jnp.bfloat16)
    h1 = jnp.dot(x, w1_ref[...], preferred_element_type=jnp.float32)
    h1 = jnp.maximum(h1 + b1_ref[...], 0.0).astype(jnp.bfloat16)

    # Layer 2: Linear(512->256) with BN2 scale folded into W2 and the linear2
    # bias folded into the shift; fused +shift, ReLU, bf16 cast.
    h2 = jnp.dot(h1, w2_ref[...], preferred_element_type=jnp.float32)
    h2 = jnp.maximum(h2 + b2_ref[...], 0.0).astype(jnp.bfloat16)

    # Layer 3: Linear(256->40), zero-padded to 128 output lanes (dense stores),
    # stored in bf16 to halve output HBM traffic.
    out = jnp.dot(h2, w3_ref[...], preferred_element_type=jnp.float32)
    o_ref[...] = (out + b3_ref[...]).astype(o_ref.dtype)


def _round_up(n, m):
    return (n + m - 1) // m * m


def shape_classifier_2_forward(x, params, *, tb=None):
    """x: any shape with a leading batch dim; flattened to (B, 1024) like PyTorch."""
    B = x.shape[0]
    x2d = x.reshape(B, -1)           # flatten only; no dtype/pad copy passes over HBM
    assert x2d.shape[1] == D_IN, f"expected {D_IN} flattened features, got {x2d.shape[1]}"

    # Batch tile: large (up to 512 rows) to amortize the ~0.35us grid-step
    # overhead, but split into >=2 grid steps when B allows so both v7x
    # TensorCores get work under dimension_semantics=("parallel",).
    if tb is None:
        tb = min(512, _round_up(pl.cdiv(B, 2), 8))
    tb = max(8, _round_up(tb, 8))
    grid_len = pl.cdiv(B, tb)
    # Padded output rows: last x block may read past B (undefined rows), which
    # only produces garbage output rows that are sliced off below.
    B_pad = grid_len * tb

    (w1, b1, w2, b2, w3, b3) = params

    const = lambda i: (0, 0)
    # Constant-index blocks never re-DMA across the grid -> single buffer.
    resident = dict(pipeline_mode=pl.Buffered(buffer_count=1))

    flops = 2 * B_pad * (D_IN * D_H1 + D_H1 * D_H2 + D_H2 * D_OUT_PAD)
    bytes_accessed = (
        B_pad * (D_IN * x2d.dtype.itemsize + D_OUT_PAD * 2)          # stream x + out
        + (D_IN * D_H1 + D_H1 * D_H2 + D_H2 * D_OUT_PAD) * 2         # bf16 weights
        + (D_H1 + D_H2 + D_OUT_PAD) * 4)                             # f32 shifts

    out = pl.pallas_call(
        _mlp_kernel,
        out_shape=jax.ShapeDtypeStruct((B_pad, D_OUT_PAD), jnp.bfloat16),
        grid_spec=pltpu.PrefetchScalarGridSpec(
            num_scalar_prefetch=0,
            grid=(grid_len,),
            in_specs=[
                pl.BlockSpec((tb, D_IN), lambda i: (i, 0)),            # x tile (native dtype)
                pl.BlockSpec((D_IN, D_H1), const, **resident),         # W1^T * s1 (bf16)
                pl.BlockSpec((1, D_H1), const, **resident),            # shift1 (f32)
                pl.BlockSpec((D_H1, D_H2), const, **resident),         # W2^T * s2 (bf16)
                pl.BlockSpec((1, D_H2), const, **resident),            # shift2 (f32)
                pl.BlockSpec((D_H2, D_OUT_PAD), const, **resident),    # W3^T padded (bf16)
                pl.BlockSpec((1, D_OUT_PAD), const, **resident),       # bias3 padded (f32)
            ],
            out_specs=pl.BlockSpec((tb, D_OUT_PAD), lambda i: (i, 0)),
        ),
        compiler_params=pltpu.CompilerParams(
            dimension_semantics=("parallel",),
            vmem_limit_bytes=32 * 1024 * 1024,
        ),
        cost_estimate=pl.CostEstimate(
            flops=flops, transcendentals=0, bytes_accessed=bytes_accessed),
    )(x2d, w1, b1, w2, b2, w3, b3)

    # Slice off pad rows / pad lanes; upcast the tiny (B, 40) result to f32 to
    # preserve the module's output dtype.
    return out[:B, :D_OUT].astype(jnp.float32)


def init_raw_params(key):
    """Deterministic synthetic parameters matching the PyTorch module (eval mode)."""
    ks = jax.random.split(key, 13)
    raw = dict(
        # nn.Linear weights are (out, in).
        w1=jax.random.normal(ks[0], (D_H1, D_IN), jnp.float32) * 0.02,
        w2=jax.random.normal(ks[1], (D_H2, D_H1), jnp.float32) * 0.02,
        lb2=jax.random.normal(ks[2], (D_H2,), jnp.float32) * 0.02,
        w3=jax.random.normal(ks[3], (D_OUT, D_H2), jnp.float32) * 0.02,
        lb3=jax.random.normal(ks[4], (D_OUT,), jnp.float32) * 0.02,
        # BatchNorm1d affine params + running stats.
        g1=1.0 + 0.1 * jax.random.normal(ks[5], (D_H1,), jnp.float32),
        be1=0.1 * jax.random.normal(ks[6], (D_H1,), jnp.float32),
        rm1=0.1 * jax.random.normal(ks[7], (D_H1,), jnp.float32),
        rv1=1.0 + 0.1 * jax.random.uniform(ks[8], (D_H1,), jnp.float32),
        g2=1.0 + 0.1 * jax.random.normal(ks[9], (D_H2,), jnp.float32),
        be2=0.1 * jax.random.normal(ks[10], (D_H2,), jnp.float32),
        rm2=0.1 * jax.random.normal(ks[11], (D_H2,), jnp.float32),
        rv2=1.0 + 0.1 * jax.random.uniform(ks[12], (D_H2,), jnp.float32),
    )
    return raw


def fold_params(raw):
    """Fold BN (eval) + linear biases into bf16 weights and f32 shift vectors.

    bn(y) = gamma * (y - mean) / sqrt(var + eps) + beta  =  y * s + b
    Scales s go into the weight columns; shifts b stay as per-feature adds.
    """
    s1 = raw["g1"] / jnp.sqrt(raw["rv1"] + BN_EPS)
    b1 = raw["be1"] - raw["rm1"] * s1                     # linear1 has no bias
    s2 = raw["g2"] / jnp.sqrt(raw["rv2"] + BN_EPS)
    b2 = raw["be2"] + (raw["lb2"] - raw["rm2"]) * s2      # linear2 bias folded in

    w1f = (raw["w1"].T * s1[None, :]).astype(jnp.bfloat16)            # (1024, 512)
    w2f = (raw["w2"].T * s2[None, :]).astype(jnp.bfloat16)            # (512, 256)
    w3f = jnp.zeros((D_H2, D_OUT_PAD), jnp.float32)
    w3f = w3f.at[:, :D_OUT].set(raw["w3"].T).astype(jnp.bfloat16)     # (256, 128)
    b3f = jnp.zeros((1, D_OUT_PAD), jnp.float32).at[0, :D_OUT].set(raw["lb3"])

    return (w1f,
            b1.reshape(1, D_H1),
            w2f,
            b2.reshape(1, D_H2),
            w3f,
            b3f)


def _reference(x, raw):
    """Pure-JAX f32 reference of the original (eval-mode) PyTorch forward pass."""
    x2d = x.reshape(x.shape[0], -1).astype(jnp.float32)
    h = x2d @ raw["w1"].T
    h = (h - raw["rm1"]) / jnp.sqrt(raw["rv1"] + BN_EPS) * raw["g1"] + raw["be1"]
    h = jnp.maximum(h, 0.0)
    h = h @ raw["w2"].T + raw["lb2"]
    h = (h - raw["rm2"]) / jnp.sqrt(raw["rv2"] + BN_EPS) * raw["g2"] + raw["be2"]
    h = jnp.maximum(h, 0.0)
    return h @ raw["w3"].T + raw["lb3"]


if __name__ == "__main__":
    key = jax.random.PRNGKey(0)
    k_p, k_x = jax.random.split(key)

    raw = init_raw_params(k_p)
    params = fold_params(raw)

    # Example input: NCHW (2, 4, 16, 16) -> flattens to (2, 1024), like the
    # PyTorch module's x.reshape(x.shape[0], -1).
    x = jax.random.normal(k_x, (2, 4, 16, 16), jnp.float32)

    out = shape_classifier_2_forward(x, params)
    out = jax.block_until_ready(out)

    ref = _reference(x, raw)
    assert out.shape == (2, D_OUT), out.shape
    # bf16 matmul inputs + bf16 output store -> compare against the f32
    # reference with a bf16-sized tolerance (output magnitudes here are ~0.05).
    assert jnp.allclose(out, ref, atol=1e-2, rtol=1e-2), "mismatch vs reference"

    print("KERNEL_OK")
</pallas_src>

<mosaic_0001>
module attributes {stable_mosaic.version = 11 : i64} {
  func.func @_mlp_kernel(%arg0: i32, %arg1: memref<8x1024xf32, #tpu.memory_space<vmem>>, %arg2: memref<1024x512xbf16, #tpu.memory_space<vmem>>, %arg3: memref<1x512xf32, #tpu.memory_space<vmem>>, %arg4: memref<512x256xbf16, #tpu.memory_space<vmem>>, %arg5: memref<1x256xf32, #tpu.memory_space<vmem>>, %arg6: memref<256x128xbf16, #tpu.memory_space<vmem>>, %arg7: memref<1x128xf32, #tpu.memory_space<vmem>>, %arg8: memref<8x128xbf16, #tpu.memory_space<vmem>>) attributes {dimension_semantics = [#tpu.dimension_semantics<parallel>], iteration_bounds = array<i64: 1>, scalar_prefetch = 0 : i64, scratch_operands = 0 : i64, tpu.core_type = #tpu.core_type<tc>, window_params = [{transform_indices = @transform_0, window_bounds = array<i64: 8, 1024>}, {pipeline_mode = #tpu.pipeline_mode<synchronous>, transform_indices = @transform_1, window_bounds = array<i64: 1024, 512>}, {pipeline_mode = #tpu.pipeline_mode<synchronous>, transform_indices = @transform_2, window_bounds = array<i64: 1, 512>}, {pipeline_mode = #tpu.pipeline_mode<synchronous>, transform_indices = @transform_3, window_bounds = array<i64: 512, 256>}, {pipeline_mode = #tpu.pipeline_mode<synchronous>, transform_indices = @transform_4, window_bounds = array<i64: 1, 256>}, {pipeline_mode = #tpu.pipeline_mode<synchronous>, transform_indices = @transform_5, window_bounds = array<i64: 256, 128>}, {pipeline_mode = #tpu.pipeline_mode<synchronous>, transform_indices = @transform_6, window_bounds = array<i64: 1, 128>}, {transform_indices = @transform_7, window_bounds = array<i64: 8, 128>}]} {
    %c0 = arith.constant 0 : index
    %c0_0 = arith.constant 0 : index
    %0 = vector.load %arg1[%c0, %c0_0] : memref<8x1024xf32, #tpu.memory_space<vmem>>, vector<8x1024xf32>
    %1 = arith.truncf %0 : vector<8x1024xf32> to vector<8x1024xbf16>
    %c0_1 = arith.constant 0 : index
    %c0_2 = arith.constant 0 : index
    %2 = vector.load %arg2[%c0_1, %c0_2] : memref<1024x512xbf16, #tpu.memory_space<vmem>>, vector<1024x512xbf16>
    %cst = arith.constant dense<0.000000e+00> : vector<8x512xf32>
    %3 = tpu.matmul %1, %2, %cst {dimension_numbers = #tpu.dot_dimension_numbers<[1], [0], [0], [1], [0, 0, 1, 1], [], []>} : vector<8x1024xbf16>, vector<1024x512xbf16>, vector<8x512xf32> -> vector<8x512xf32>
    %c0_3 = arith.constant 0 : index
    %c0_4 = arith.constant 0 : index
    %4 = vector.load %arg3[%c0_3, %c0_4] : memref<1x512xf32, #tpu.memory_space<vmem>>, vector<1x512xf32>
    %5 = vector.broadcast %4 : vector<1x512xf32> to vector<8x512xf32>
    %6 = arith.addf %3, %5 : vector<8x512xf32>
    %cst_5 = arith.constant 0.000000e+00 : f32
    %7 = vector.broadcast %cst_5 : f32 to vector<8x512xf32>
    %8 = arith.maximumf %6, %7 : vector<8x512xf32>
    %9 = arith.truncf %8 : vector<8x512xf32> to vector<8x512xbf16>
    %c0_6 = arith.constant 0 : index
    %c0_7 = arith.constant 0 : index
    %10 = vector.load %arg4[%c0_6, %c0_7] : memref<512x256xbf16, #tpu.memory_space<vmem>>, vector<512x256xbf16>
    %cst_8 = arith.constant dense<0.000000e+00> : vector<8x256xf32>
    %11 = tpu.matmul %9, %10, %cst_8 {dimension_numbers = #tpu.dot_dimension_numbers<[1], [0], [0], [1], [0, 0, 1, 1], [], []>} : vector<8x512xbf16>, vector<512x256xbf16>, vector<8x256xf32> -> vector<8x256xf32>
    %c0_9 = arith.constant 0 : index
    %c0_10 = arith.constant 0 : index
    %12 = vector.load %arg5[%c0_9, %c0_10] : memref<1x256xf32, #tpu.memory_space<vmem>>, vector<1x256xf32>
    %13 = vector.broadcast %12 : vector<1x256xf32> to vector<8x256xf32>
    %14 = arith.addf %11, %13 : vector<8x256xf32>
    %cst_11 = arith.constant 0.000000e+00 : f32
    %15 = vector.broadcast %cst_11 : f32 to vector<8x256xf32>
    %16 = arith.maximumf %14, %15 : vector<8x256xf32>
    %17 = arith.truncf %16 : vector<8x256xf32> to vector<8x256xbf16>
    %c0_12 = arith.constant 0 : index
    %c0_13 = arith.constant 0 : index
    %18 = vector.load %arg6[%c0_12, %c0_13] : memref<256x128xbf16, #tpu.memory_space<vmem>>, vector<256x128xbf16>
    %cst_14 = arith.constant dense<0.000000e+00> : vector<8x128xf32>
    %19 = tpu.matmul %17, %18, %cst_14 {dimension_numbers = #tpu.dot_dimension_numbers<[1], [0], [0], [1], [0, 0, 1, 1], [], []>} : vector<8x256xbf16>, vector<256x128xbf16>, vector<8x128xf32> -> vector<8x128xf32>
    %c0_15 = arith.constant 0 : index
    %c0_16 = arith.constant 0 : index
    %20 = vector.load %arg7[%c0_15, %c0_16] : memref<1x128xf32, #tpu.memory_space<vmem>>, vector<1x128xf32>
    %21 = vector.broadcast %20 : vector<1x128xf32> to vector<8x128xf32>
    %22 = arith.addf %19, %21 : vector<8x128xf32>
    %23 = arith.truncf %22 : vector<8x128xf32> to vector<8x128xbf16>
    %c0_17 = arith.constant 0 : index
    %c0_18 = arith.constant 0 : index
    %24 = vector.load %arg8[%c0_17, %c0_18] : memref<8x128xbf16, #tpu.memory_space<vmem>>, vector<8x128xbf16>
    tpu.vector_store %arg8[%c0_17, %c0_18], %23 {strides = array<i32>} : memref<8x128xbf16, #tpu.memory_space<vmem>>, vector<8x128xbf16>,
    return
  }
  func.func @transform_0(%arg0: i32) -> (i32, i32) {
    %c0_i32 = arith.constant 0 : i32
    %c0_i32_0 = arith.constant 0 : i32
    return %arg0, %c0_i32 : i32, i32
  }
  func.func @transform_1(%arg0: i32) -> (i32, i32) {
    %c0_i32 = arith.constant 0 : i32
    %c0_i32_0 = arith.constant 0 : i32
    %c0_i32_1 = arith.constant 0 : i32
    return %c0_i32, %c0_i32_0 : i32, i32
  }
  func.func @transform_2(%arg0: i32) -> (i32, i32) {
    %c0_i32 = arith.constant 0 : i32
    %c0_i32_0 = arith.constant 0 : i32
    %c0_i32_1 = arith.constant 0 : i32
    return %c0_i32, %c0_i32_0 : i32, i32
  }
  func.func @transform_3(%arg0: i32) -> (i32, i32) {
    %c0_i32 = arith.constant 0 : i32
    %c0_i32_0 = arith.constant 0 : i32
    %c0_i32_1 = arith.constant 0 : i32
    return %c0_i32, %c0_i32_0 : i32, i32
  }
  func.func @transform_4(%arg0: i32) -> (i32, i32) {
    %c0_i32 = arith.constant 0 : i32
    %c0_i32_0 = arith.constant 0 : i32
    %c0_i32_1 = arith.constant 0 : i32
    return %c0_i32, %c0_i32_0 : i32, i32
  }
  func.func @transform_5(%arg0: i32) -> (i32, i32) {
    %c0_i32 = arith.constant 0 : i32
    %c0_i32_0 = arith.constant 0 : i32
    %c0_i32_1 = arith.constant 0 : i32
    return %c0_i32, %c0_i32_0 : i32, i32
  }
  func.func @transform_6(%arg0: i32) -> (i32, i32) {
    %c0_i32 = arith.constant 0 : i32
    %c0_i32_0 = arith.constant 0 : i32
    %c0_i32_1 = arith.constant 0 : i32
    return %c0_i32, %c0_i32_0 : i32, i32
  }
  func.func @transform_7(%arg0: i32) -> (i32, i32) {
    %c0_i32 = arith.constant 0 : i32
    %c0_i32_0 = arith.constant 0 : i32
    return %arg0, %c0_i32 : i32, i32
  }
}

</mosaic_0001>

<bundles_post_ra>
// kernel: tpu_custom_call.1
= control target key start
LH: loop header
LB: loop body
LE: loop exit
PB: predicated region body
PF: predicated region fallthrough
CT: control target
= control target key end

     0   :  { %12 = vsyncpa [#allocation3], 0  ;;  %s4809_s0 = inlined_call_operand.hbm [shape: f32[2,1024], index: 0, kind: input, shape index: {}]   ;;  %s4810_s1 = inlined_call_operand.hbm [shape: bf16[1024,512], index: 1, kind: input, shape index: {}]   ;;  %s4811_s2 = inlined_call_operand.hbm [shape: f32[1,512], index: 2, kind: input, shape index: {}]   ;;  %s4812_s3 = inlined_call_operand.hbm [shape: bf16[512,256], index: 3, kind: input, shape index: {}]   ;;  %s4813_s4 = inlined_call_operand.vmem [shape: f32[1,256], index: 4, kind: input, shape index: {}]   ;;  %s4814_s5 = inlined_call_operand.hbm [shape: bf16[256,128], index: 5, kind: input, shape index: {}]   ;;  %s4815_s6 = inlined_call_operand.vmem [shape: f32[1,128], index: 6, kind: input, shape index: {}]   ;;  %s4816_s7 = inlined_call_operand.hbm [shape: bf16[8,128], index: 7, kind: output, shape index: {}]  }
   0x1   :  { %13 = vsyncpa [#allocation6], 0 }
   0x2   :  { %14 = vsyncpa [#allocation9], 0 }
   0x3   :  { %15 = vsyncpa [#allocation4], 0 }
   0x4   :  { %19 = vsyncadd [#allocation3], 768  ;;  %s33_s26 = sshll.u32 %s4810_s1, 4  ;;  %s4651_s27 = smov [#allocation5]   ;;  %s34_s26 = int_to_ptr.hbm [resolvable:$true] %s33_s26 }
   0x5   :  { %s35_s28 = sshll.u32 %s4651_s27, 4  ;;  %s57_s8 = sshll.u32 %s4812_s3, 4  ;;  %s36_s28 = int_to_ptr.vmem [resolvable:$true] %s35_s28  ;;  %s58_s8 = int_to_ptr.hbm [resolvable:$true] %s57_s8 }
   0x6   :  { %s4652_s9 = smov 256   ;;  %s4653_s10 = smov 16  }
   0x7   :  { %41 = dma.hbm_to_vmem [thread:$0]  %s34_s26, 32768, %s36_s28, [#allocation6], %s4652_s9, %s4652_s9, %s4653_s10  }
   0x8   :  { %s4654_s11 = smov [#allocation8]   ;;  %s4655_s13 = smov 128  }
   0x9   :  { %s59_s12 = sshll.u32 %s4654_s11, 4  ;;  %s4656_s14 = smov 8   ;;  %s60_s12 = int_to_ptr.vmem [resolvable:$true] %s59_s12 }
   0xa   :  { %65 = dma.hbm_to_vmem [thread:$0]  %s58_s8, 8192, %s60_s12, [#allocation9], %s4655_s13, %s4655_s13, %s4656_s14  }
   0xb   :  { %s20_s16 = sshll.u32 %s4809_s0, 4  ;;  %s4657_s17 = smov [#allocation2]   ;;  %s21_s16 = int_to_ptr.hbm [resolvable:$true] %s20_s16 }
   0xc   :  { %s22_s18 = sshll.u32 %s4657_s17, 4  ;;  %s47_s20 = sshll.u32 %s4811_s2, 4  ;;  %s23_s18 = int_to_ptr.vmem [resolvable:$true] %s22_s18  ;;  %s48_s20 = int_to_ptr.hbm [resolvable:$true] %s47_s20 }
   0xd   :  { %28 = dma.hbm_to_vmem [thread:$0]  %s21_s16, 256, %s23_s18, [#allocation3], %s4652_s9, %s4652_s9, %s4653_s10  }
   0xe   :  { %s4658_s21 = smov [#allocation7]   ;;  %s72_s25 = sshll.u32 %s4814_s5, 4  ;;  %s73_s25 = int_to_ptr.hbm [resolvable:$true] %s72_s25 }
   0xf   :  { %s49_s22 = sshll.u32 %s4658_s21, 4  ;;  %s4659_s0 = smov [#allocation10]   ;;  %s50_s22 = int_to_ptr.vmem [resolvable:$true] %s49_s22 }
  0x10   :  { %52 = dma.hbm_to_vmem [thread:$0]  %s48_s20, 64, %s50_s22, [#allocation6]  }
  0x11   :  { %s74_s26 = sshll.u32 %s4659_s0, 4  ;;  %s4660_s27 = smov 64   ;;  %s75_s26 = int_to_ptr.vmem [resolvable:$true] %s74_s26 }
  0x12   :  { %s4661_s28 = smov 4  }
  0x13   :  { %80 = dma.hbm_to_vmem [thread:$0]  %s73_s25, 2048, %s75_s26, [#allocation9], %s4660_s27, %s4660_s27, %s4661_s28  }
  0x14   :  { %4643 = dma.done.wait [#allocation3], 1024  }
  0x15   :  { %4644 = vsyncadd [#allocation3], 4294966272 }
  0x16   :  { %4645 = dma.done.wait [#allocation6], 32832  }
  0x17   :  { %4646 = vsyncadd [#allocation6], 4294934464 }
  0x18   :  { %4647 = dma.done.wait [#allocation9], 10240  }
  0x19   :  { %4648 = vsyncadd [#allocation9], 4294957056  ;;  %v2919_v0 = vld [vmem:[#allocation5 + $0xe0] sm:$0xf]  ;;  %v4179_v1 = vld [vmem:[#allocation5 + $0xec] sm:$0xf0] }
  0x1a   :  { %v3047_v2 = vld [vmem:[#allocation5 + $0x1e0] sm:$0xf]  ;;  %v2920_v3 = vor.u32 %v4179_v1, %v2919_v0  ;;  %v4211_v4 = vld [vmem:[#allocation5 + $0x1ec] sm:$0xf0]  ;;  %s4662_s30 = smov [#allocation11]   ;;  %s2793_s11 = sshll.u32 %s4816_s7, 4  ;;  %s2794_s11 = int_to_ptr.hbm [resolvable:$true] %s2793_s11 }
  0x1b   :  { %v3175_v5 = vld [vmem:[#allocation5 + $0x2e0] sm:$0xf]  ;;  %v4243_v6 = vld [vmem:[#allocation5 + $0x2ec] sm:$0xf0]  ;;  %v3048_v7 = vor.u32 %v4211_v4, %v3047_v2  ;;  %s2791_s8 = sshll.u32 %s4662_s30, 4  ;;  %s2792_s8 = int_to_ptr.vmem [resolvable:$true] %s2791_s8 }
  0x1c   :  { %v3176_v8 = vor.u32 %v4243_v6, %v3175_v5  ;;  %v3303_v9 = vld [vmem:[#allocation5 + $0x3e0] sm:$0xf]  ;;  %v4275_v10 = vld [vmem:[#allocation5 + $0x3ec] sm:$0xf0]  ;;  %1704 = vmatpush.bf16.msra.mxu0 %v2920_v3 }
  0x1d   :  { %v2903_v11 = vld [vmem:[#allocation5 + $0xc0] sm:$0xf]  ;;  %v3304_v12 = vor.u32 %v4275_v10, %v3303_v9  ;;  %v4175_v13 = vld [vmem:[#allocation5 + $0xcc] sm:$0xf0]  ;;  %1717 = vmatpush.bf16.msra.mxu1 %v3048_v7 }
  0x1e   :  { %v3031_v14 = vld [vmem:[#allocation5 + $0x1c0] sm:$0xf]  ;;  %v4207_v15 = vld [vmem:[#allocation5 + $0x1cc] sm:$0xf0]  ;;  %1730 = vmatpush.bf16.msra.mxu2 %v3176_v8  ;;  %v2904_v16 = vor.u32 %v4175_v13, %v2903_v11 }
  0x1f   :  { %v3032_v17 = vor.u32 %v4207_v15, %v3031_v14  ;;  %v3159_v18 = vld [vmem:[#allocation5 + $0x2c0] sm:$0xf]  ;;  %v4239_v19 = vld [vmem:[#allocation5 + $0x2cc] sm:$0xf0]  ;;  %1743 = vmatpush.bf16.msra.mxu3 %v3304_v12 }
  0x20   :  { %v3287_v20 = vld [vmem:[#allocation5 + $0x3c0] sm:$0xf]  ;;  %v3160_v21 = vor.u32 %v4239_v19, %v3159_v18  ;;  %v4271_v22 = vld [vmem:[#allocation5 + $0x3cc] sm:$0xf0]  ;;  %1705 = vmatpush.bf16.msra.mxu0 %v2904_v16 }
  0x21   :  { %v2887_v23 = vld [vmem:[#allocation5 + $0xa0] sm:$0xf]  ;;  %v4171_v24 = vld [vmem:[#allocation5 + $0xac] sm:$0xf0]  ;;  %v3288_v25 = vor.u32 %v4271_v22, %v3287_v20  ;;  %1718 = vmatpush.bf16.msra.mxu1 %v3032_v17 }
  0x22   :  { %v3015_v26 = vld [vmem:[#allocation5 + $0x1a0] sm:$0xf]  ;;  %v4203_v27 = vld [vmem:[#allocation5 + $0x1ac] sm:$0xf0]  ;;  %v2888_v29 = vor.u32 %v4171_v24, %v2887_v23  ;;  %1731 = vmatpush.bf16.msra.mxu2 %v3160_v21 }
  0x23   :  { %v3143_v28 = vld [vmem:[#allocation5 + $0x2a0] sm:$0xf]  ;;  %v4235_v30 = vld [vmem:[#allocation5 + $0x2ac] sm:$0xf0]  ;;  %v3016_v33 = vor.u32 %v4203_v27, %v3015_v26  ;;  %1744 = vmatpush.bf16.msra.mxu3 %v3288_v25 }
  0x24   :  { %v3271_v31 = vld [vmem:[#allocation5 + $0x3a0] sm:$0xf]  ;;  %v4267_v32 = vld [vmem:[#allocation5 + $0x3ac] sm:$0xf0]  ;;  %v3144_v34 = vor.u32 %v4235_v30, %v3143_v28  ;;  %1706 = vmatpush.bf16.msra.mxu0 %v2888_v29 }
  0x25   :  { %v2871_v35 = vld [vmem:[#allocation5 + $0x80] sm:$0xf]  ;;  %v4167_v36 = vld [vmem:[#allocation5 + $0x8c] sm:$0xf0]  ;;  %v3272_v38 = vor.u32 %v4267_v32, %v3271_v31  ;;  %1719 = vmatpush.bf16.msra.mxu1 %v3016_v33 }
  0x26   :  { %v2999_v37 = vld [vmem:[#allocation5 + $0x180] sm:$0xf]  ;;  %v4199_v39 = vld [vmem:[#allocation5 + $0x18c] sm:$0xf0]  ;;  %v2872_v44 = vor.u32 %v4167_v36, %v2871_v35  ;;  %1732 = vmatpush.bf16.msra.mxu2 %v3144_v34 }
  0x27   :  { %v3127_v40 = vld [vmem:[#allocation5 + $0x280] sm:$0xf]  ;;  %v4231_v41 = vld [vmem:[#allocation5 + $0x28c] sm:$0xf0]  ;;  %v3000_v45 = vor.u32 %v4199_v39, %v2999_v37  ;;  %1745 = vmatpush.bf16.msra.mxu3 %v3272_v38 }
  0x28   :  { %v3255_v42 = vld [vmem:[#allocation5 + $0x380] sm:$0xf]  ;;  %v4263_v43 = vld [vmem:[#allocation5 + $0x38c] sm:$0xf0]  ;;  %v3128_v46 = vor.u32 %v4231_v41, %v3127_v40  ;;  %1707 = vmatpush.bf16.msra.mxu0 %v2872_v44 }
  0x29   :  { %v2855_v47 = vld [vmem:[#allocation5 + $0x60] sm:$0xf]  ;;  %v4163_v48 = vld [vmem:[#allocation5 + $0x6c] sm:$0xf0]  ;;  %v3256_v50 = vor.u32 %v4263_v43, %v3255_v42  ;;  %1720 = vmatpush.bf16.msra.mxu1 %v3000_v45 }
  0x2a   :  { %v2983_v49 = vld [vmem:[#allocation5 + $0x160] sm:$0xf]  ;;  %v4195_v51 = vld [vmem:[#allocation5 + $0x16c] sm:$0xf0]  ;;  %v2856_v56 = vor.u32 %v4163_v48, %v2855_v47  ;;  %1733 = vmatpush.bf16.msra.mxu2 %v3128_v46 }
  0x2b   :  { %v3111_v52 = vld [vmem:[#allocation5 + $0x260] sm:$0xf]  ;;  %v4227_v53 = vld [vmem:[#allocation5 + $0x26c] sm:$0xf0]  ;;  %v2984_v57 = vor.u32 %v4195_v51, %v2983_v49  ;;  %1746 = vmatpush.bf16.msra.mxu3 %v3256_v50 }
  0x2c   :  { %v3239_v54 = vld [vmem:[#allocation5 + $0x360] sm:$0xf]  ;;  %v4259_v55 = vld [vmem:[#allocation5 + $0x36c] sm:$0xf0]  ;;  %v3112_v58 = vor.u32 %v4227_v53, %v3111_v52  ;;  %1708 = vmatpush.bf16.msra.mxu0 %v2856_v56 }
  0x2d   :  { %v2839_v59 = vld [vmem:[#allocation5 + $0x40] sm:$0xf]  ;;  %v4159_v60 = vld [vmem:[#allocation5 + $0x4c] sm:$0xf0]  ;;  %v3240_v62 = vor.u32 %v4259_v55, %v3239_v54  ;;  %1721 = vmatpush.bf16.msra.mxu1 %v2984_v57 }
  0x2e   :  { %v2967_v61 = vld [vmem:[#allocation5 + $0x140] sm:$0xf]  ;;  %v4191_v63 = vld [vmem:[#allocation5 + $0x14c] sm:$0xf0]  ;;  %v2840_v4 = vor.u32 %v4159_v60, %v2839_v59  ;;  %1734 = vmatpush.bf16.msra.mxu2 %v3112_v58 }
  0x2f   :  { %v3095_v0 = vld [vmem:[#allocation5 + $0x240] sm:$0xf]  ;;  %v4223_v1 = vld [vmem:[#allocation5 + $0x24c] sm:$0xf0]  ;;  %v2968_v5 = vor.u32 %v4191_v63, %v2967_v61  ;;  %1747 = vmatpush.bf16.msra.mxu3 %v3240_v62 }
  0x30   :  { %v3223_v2 = vld [vmem:[#allocation5 + $0x340] sm:$0xf]  ;;  %v4255_v3 = vld [vmem:[#allocation5 + $0x34c] sm:$0xf0]  ;;  %v3096_v6 = vor.u32 %v4223_v1, %v3095_v0  ;;  %1709 = vmatpush.bf16.msra.mxu0 %v2840_v4 }
  0x31   :  { %v2823_v7 = vld [vmem:[#allocation5 + $0x20] sm:$0xf]  ;;  %v4155_v8 = vld [vmem:[#allocation5 + $0x2c] sm:$0xf0]  ;;  %v3224_v10 = vor.u32 %v4255_v3, %v3223_v2  ;;  %1722 = vmatpush.bf16.msra.mxu1 %v2968_v5 }
  0x32   :  { %v2951_v9 = vld [vmem:[#allocation5 + $0x120] sm:$0xf]  ;;  %v4187_v11 = vld [vmem:[#allocation5 + $0x12c] sm:$0xf0]  ;;  %v2824_v16 = vor.u32 %v4155_v8, %v2823_v7  ;;  %1735 = vmatpush.bf16.msra.mxu2 %v3096_v6 }
  0x33   :  { %v3079_v12 = vld [vmem:[#allocation5 + $0x220] sm:$0xf]  ;;  %v4219_v13 = vld [vmem:[#allocation5 + $0x22c] sm:$0xf0]  ;;  %v2952_v19 = vor.u32 %v4187_v11, %v2951_v9  ;;  %1748 = vmatpush.bf16.msra.mxu3 %v3224_v10 }
  0x34   :  { %v3207_v14 = vld [vmem:[#allocation5 + $0x320] sm:$0xf]  ;;  %v4251_v15 = vld [vmem:[#allocation5 + $0x32c] sm:$0xf0]  ;;  %v3080_v20 = vor.u32 %v4219_v13, %v3079_v12  ;;  %1710 = vmatpush.bf16.msra.mxu0 %v2824_v16 }
  0x35   :  { %v2807_v17 = vld [vmem:[#allocation5] sm:$0xf]  ;;  %v4151_v18 = vld [vmem:[#allocation5 + $0xc] sm:$0xf0]  ;;  %v3208_v24 = vor.u32 %v4251_v15, %v3207_v14  ;;  %1723 = vmatpush.bf16.msra.mxu1 %v2952_v19 }
  0x36   :  { %v2935_v21 = vld [vmem:[#allocation5 + $0x100] sm:$0xf]  ;;  %v4183_v22 = vld [vmem:[#allocation5 + $0x10c] sm:$0xf0]  ;;  %v2808_v31 = vor.u32 %v4151_v18, %v2807_v17  ;;  %1736 = vmatpush.bf16.msra.mxu2 %v3080_v20 }
  0x37   :  { %v3063_v23 = vld [vmem:[#allocation5 + $0x200] sm:$0xf]  ;;  %v4215_v25 = vld [vmem:[#allocation5 + $0x20c] sm:$0xf0]  ;;  %v2936_v35 = vor.u32 %v4183_v22, %v2935_v21  ;;  %1749 = vmatpush.bf16.msra.mxu3 %v3208_v24 }
  0x38   :  { %v3191_v26 = vld [vmem:[#allocation5 + $0x300] sm:$0xf]  ;;  %v4247_v27 = vld [vmem:[#allocation5 + $0x30c] sm:$0xf0]  ;;  %v3064_v36 = vor.u32 %v4215_v25, %v3063_v23  ;;  %1711 = vmatpush.bf16.msra.mxu0 %v2808_v31 }
  0x39   :  { %v3431_v28 = vld [vmem:[#allocation5 + $0x4e0] sm:$0xf]  ;;  %v4307_v29 = vld [vmem:[#allocation5 + $0x4ec] sm:$0xf0]  ;;  %v3192_v39 = vor.u32 %v4247_v27, %v3191_v26  ;;  %1724 = vmatpush.bf16.msra.mxu1 %v2936_v35 }
  0x3a   :  { %v3559_v30 = vld [vmem:[#allocation5 + $0x5e0] sm:$0xf]  ;;  %v4339_v32 = vld [vmem:[#allocation5 + $0x5ec] sm:$0xf0]  ;;  %v3432_v40 = vor.u32 %v4307_v29, %v3431_v28  ;;  %1737 = vmatpush.bf16.msra.mxu2 %v3064_v36 }
  0x3b   :  { %v3687_v33 = vld [vmem:[#allocation5 + $0x6e0] sm:$0xf]  ;;  %v4371_v34 = vld [vmem:[#allocation5 + $0x6ec] sm:$0xf0]  ;;  %v3560_v41 = vor.u32 %v4339_v32, %v3559_v30  ;;  %1750 = vmatpush.bf16.msra.mxu3 %v3192_v39 }
  0x3c   :  { %v3815_v37 = vld [vmem:[#allocation5 + $0x7e0] sm:$0xf]  ;;  %v4403_v38 = vld [vmem:[#allocation5 + $0x7ec] sm:$0xf0]  ;;  %v3688_v42 = vor.u32 %v4371_v34, %v3687_v33  ;;  %1756 = vmatpush.bf16.msrb.mxu0 %v3432_v40 }
  0x3d   :  { %v3415_v43 = vld [vmem:[#allocation5 + $0x4c0] sm:$0xf]  ;;  %v4303_v44 = vld [vmem:[#allocation5 + $0x4cc] sm:$0xf0]  ;;  %v3816_v46 = vor.u32 %v4403_v38, %v3815_v37  ;;  %1769 = vmatpush.bf16.msrb.mxu1 %v3560_v41 }
  0x3e   :  { %v3543_v45 = vld [vmem:[#allocation5 + $0x5c0] sm:$0xf]  ;;  %v4335_v47 = vld [vmem:[#allocation5 + $0x5cc] sm:$0xf0]  ;;  %v3416_v52 = vor.u32 %v4303_v44, %v3415_v43  ;;  %1782 = vmatpush.bf16.msrb.mxu2 %v3688_v42 }
  0x3f   :  { %v3671_v48 = vld [vmem:[#allocation5 + $0x6c0] sm:$0xf]  ;;  %v4367_v49 = vld [vmem:[#allocation5 + $0x6cc] sm:$0xf0]  ;;  %v3544_v54 = vor.u32 %v4335_v47, %v3543_v45  ;;  %1795 = vmatpush.bf16.msrb.mxu3 %v3816_v46 }
  0x40   :  { %v3799_v50 = vld [vmem:[#allocation5 + $0x7c0] sm:$0xf]  ;;  %v4399_v51 = vld [vmem:[#allocation5 + $0x7cc] sm:$0xf0]  ;;  %v3672_v55 = vor.u32 %v4367_v49, %v3671_v48  ;;  %1757 = vmatpush.bf16.msrb.mxu0 %v3416_v52 }
  0x41   :  { %v3399_v53 = vld [vmem:[#allocation5 + $0x4a0] sm:$0xf]  ;;  %v4299_v56 = vld [vmem:[#allocation5 + $0x4ac] sm:$0xf0]  ;;  %v3800_v59 = vor.u32 %v4399_v51, %v3799_v50  ;;  %1770 = vmatpush.bf16.msrb.mxu1 %v3544_v54 }
  0x42   :  { %v3527_v57 = vld [vmem:[#allocation5 + $0x5a0] sm:$0xf]  ;;  %v4331_v58 = vld [vmem:[#allocation5 + $0x5ac] sm:$0xf0]  ;;  %v3400_v2 = vor.u32 %v4299_v56, %v3399_v53  ;;  %1783 = vmatpush.bf16.msrb.mxu2 %v3672_v55 }
  0x43   :  { %v3655_v60 = vld [vmem:[#allocation5 + $0x6a0] sm:$0xf]  ;;  %v4363_v61 = vld [vmem:[#allocation5 + $0x6ac] sm:$0xf0]  ;;  %v3528_v6 = vor.u32 %v4331_v58, %v3527_v57  ;;  %1796 = vmatpush.bf16.msrb.mxu3 %v3800_v59 }
  0x44   :  { %v3783_v62 = vld [vmem:[#allocation5 + $0x7a0] sm:$0xf]  ;;  %v4395_v63 = vld [vmem:[#allocation5 + $0x7ac] sm:$0xf0]  ;;  %v3656_v7 = vor.u32 %v4363_v61, %v3655_v60  ;;  %1758 = vmatpush.bf16.msrb.mxu0 %v3400_v2 }
  0x45   :  { %v3383_v0 = vld [vmem:[#allocation5 + $0x480] sm:$0xf]  ;;  %v4295_v1 = vld [vmem:[#allocation5 + $0x48c] sm:$0xf0]  ;;  %v3784_v11 = vor.u32 %v4395_v63, %v3783_v62  ;;  %1771 = vmatpush.bf16.msrb.mxu1 %v3528_v6  ;;  %v104_v62 = vld [vmem:[#allocation2 + $0x8] sm:$0xff] }
  0x46   :  { %v3511_v3 = vld [vmem:[#allocation5 + $0x580] sm:$0xf]  ;;  %v105_v5 = vld [vmem:[#allocation2 + $0x10] sm:$0xff]  ;;  %v3384_v16 = vor.u32 %v4295_v1, %v3383_v0  ;;  %1784 = vmatpush.bf16.msrb.mxu2 %v3656_v7  ;;  %v106_v63 = vld [vmem:[#allocation2 + $0x18] sm:$0xff]  ;;  %127 = vst [vmem:[#allocation1 + $0x20] ss:$4 sm:$0xff] %v104_v62 }
  0x47   :  { %v103_v4 = vld [vmem:[#allocation2] sm:$0xff]  ;;  %v4327_v8 = vld [vmem:[#allocation5 + $0x58c] sm:$0xf0]  ;;  %121 = vst [vmem:[#allocation1 + $0x1] ss:$4 sm:$0xff] %v105_v5  ;;  %1797 = vmatpush.bf16.msrb.mxu3 %v3784_v11  ;;  %v110_v5 = vld [vmem:[#allocation2 + $0x38] sm:$0xff] }
  0x48   :  { %v107_v9 = vld [vmem:[#allocation2 + $0x20] sm:$0xff]  ;;  %v109_v10 = vld [vmem:[#allocation2 + $0x30] sm:$0xff]  ;;  %119 = vst [vmem:[#allocation1] ss:$4 sm:$0xff] %v103_v4  ;;  %v3512_v17 = vor.u32 %v4327_v8, %v3511_v3  ;;  %1759 = vmatpush.bf16.msrb.mxu0 %v3384_v16  ;;  %v108_v4 = vld [vmem:[#allocation2 + $0x28] sm:$0xff] }
  0x49   :  { %v3639_v12 = vld [vmem:[#allocation5 + $0x680] sm:$0xf]  ;;  %v4359_v13 = vld [vmem:[#allocation5 + $0x68c] sm:$0xf0]  ;;  %123 = vst [vmem:[#allocation1 + $0x2] ss:$4 sm:$0xff] %v107_v9 }
  0x4a   :  { %v3767_v14 = vld [vmem:[#allocation5 + $0x780] sm:$0xf]  ;;  %v4391_v15 = vld [vmem:[#allocation5 + $0x78c] sm:$0xf0]  ;;  %125 = vst [vmem:[#allocation1 + $0x3] ss:$4 sm:$0xff] %v109_v10  ;;  %v3640_v18 = vor.u32 %v4359_v13, %v3639_v12  ;;  %1772 = vmatpush.bf16.msrb.mxu1 %v3512_v17 }
  0x4b   :  { %v3367_v19 = vld [vmem:[#allocation5 + $0x460] sm:$0xf]  ;;  %v4291_v20 = vld [vmem:[#allocation5 + $0x46c] sm:$0xf0]  ;;  %v3768_v22 = vor.u32 %v4391_v15, %v3767_v14  ;;  %129 = vst [vmem:[#allocation1 + $0x21] ss:$4 sm:$0xff] %v106_v63 }
  0x4c   :  { %v3495_v21 = vld [vmem:[#allocation5 + $0x560] sm:$0xf]  ;;  %v4323_v23 = vld [vmem:[#allocation5 + $0x56c] sm:$0xf0]  ;;  %v3368_v28 = vor.u32 %v4291_v20, %v3367_v19  ;;  %1785 = vmatpush.bf16.msrb.mxu2 %v3640_v18  ;;  %v4177_v12 = vld [vmem:[#allocation5 + $0xe4] sm:$0xf] }
  0x4d   :  { %v3623_v24 = vld [vmem:[#allocation5 + $0x660] sm:$0xf]  ;;  %v4355_v25 = vld [vmem:[#allocation5 + $0x66c] sm:$0xf0]  ;;  %v3496_v31 = vor.u32 %v4323_v23, %v3495_v21  ;;  %1798 = vmatpush.bf16.msrb.mxu3 %v3768_v22  ;;  %131 = vst [vmem:[#allocation1 + $0x22] ss:$4 sm:$0xff] %v108_v4 }
  0x4e   :  { %v3751_v26 = vld [vmem:[#allocation5 + $0x760] sm:$0xf]  ;;  %v4387_v27 = vld [vmem:[#allocation5 + $0x76c] sm:$0xf0]  ;;  %v3624_v32 = vor.u32 %v4355_v25, %v3623_v24  ;;  %1760 = vmatpush.bf16.msrb.mxu0 %v3368_v28  ;;  %v2921_v13 = vld [vmem:[#allocation5 + $0xf0] sm:$0xf0] }
  0x4f   :  { %v3351_v29 = vld [vmem:[#allocation5 + $0x440] sm:$0xf]  ;;  %v4287_v30 = vld [vmem:[#allocation5 + $0x44c] sm:$0xf0]  ;;  %v3752_v36 = vor.u32 %v4387_v27, %v3751_v26  ;;  %1773 = vmatpush.bf16.msrb.mxu1 %v3496_v31  ;;  %v4209_v14 = vld [vmem:[#allocation5 + $0x1e4] sm:$0xf]  ;;  %v2924_v24 = vor.u32 %v4177_v12, %v2921_v13 }
  0x50   :  { %v3479_v33 = vld [vmem:[#allocation5 + $0x540] sm:$0xf]  ;;  %v4319_v34 = vld [vmem:[#allocation5 + $0x54c] sm:$0xf0]  ;;  %v3352_v44 = vor.u32 %v4287_v30, %v3351_v29  ;;  %1786 = vmatpush.bf16.msrb.mxu2 %v3624_v32  ;;  %133 = vst [vmem:[#allocation1 + $0x23] ss:$4 sm:$0xff] %v110_v5 }
  0x51   :  { %v3607_v35 = vld [vmem:[#allocation5 + $0x640] sm:$0xf]  ;;  %v4351_v37 = vld [vmem:[#allocation5 + $0x64c] sm:$0xf0]  ;;  %v3480_v45 = vor.u32 %v4319_v34, %v3479_v33  ;;  %1799 = vmatpush.bf16.msrb.mxu3 %v3752_v36  ;;  %v3049_v16 = vld [vmem:[#allocation5 + $0x1f0] sm:$0xf0] }
  0x52   :  { %v3735_v38 = vld [vmem:[#allocation5 + $0x740] sm:$0xf]  ;;  %v4383_v39 = vld [vmem:[#allocation5 + $0x74c] sm:$0xf0]  ;;  %v3608_v50 = vor.u32 %v4351_v37, %v3607_v35  ;;  %1761 = vmatpush.bf16.msrb.mxu0 %v3352_v44  ;;  %v4241_v17 = vld [vmem:[#allocation5 + $0x2e4] sm:$0xf]  ;;  %v3052_v26 = vor.u32 %v4209_v14, %v3049_v16 }
  0x53   :  { %v136_v40 = vld.sshfl [vmem:[#allocation1 + $0x10] sm:$0xff pattern:$0x73625140]  ;;  %v134_v41 = vld.sshfl [vmem:[#allocation1] sm:$0xff pattern:$0x73625140]  ;;  %v3736_v56 = vor.u32 %v4383_v39, %v3735_v38  ;;  %1774 = vmatpush.bf16.msrb.mxu1 %v3480_v45 }
  0x54   :  { %v3335_v42 = vld [vmem:[#allocation5 + $0x420] sm:$0xf]  ;;  %v4283_v43 = vld [vmem:[#allocation5 + $0x42c] sm:$0xf0]  ;;  %v4718_v46 = vpack.c.bf16 %v136_v40, %v136_v40  ;;  %v4720_v47 = vpack.c.bf16 %v134_v41, %v134_v41  ;;  %1787 = vmatpush.bf16.msrb.mxu2 %v3608_v50  ;;  %v3177_v18 = vld [vmem:[#allocation5 + $0x2f0] sm:$0xf0] }
  0x55   :  { %v137_v48 = vld.sshfl [vmem:[#allocation1 + $0x18] sm:$0xff pattern:$0x73625140]  ;;  %v135_v49 = vld.sshfl [vmem:[#allocation1 + $0x8] sm:$0xff pattern:$0x73625140]  ;;  %v3336_v0 = vor.u32 %v4283_v43, %v3335_v42  ;;  %1800 = vmatpush.bf16.msrb.mxu3 %v3736_v56  ;;  %v3180_v27 = vor.u32 %v4241_v17, %v3177_v18 }
  0x56   :  { %v4722_v51 = vpack.c.bf16 %v137_v48, %v137_v48  ;;  %v3463_v52 = vld [vmem:[#allocation5 + $0x520] sm:$0xf]  ;;  %v4315_v53 = vld [vmem:[#allocation5 + $0x52c] sm:$0xf0]  ;;  %v4724_v55 = vpack.c.bf16 %v135_v49, %v135_v49  ;;  %1738 = vmatmul.bf16.vlgmr.msra.gmra.mxu2 %v4718_v46  ;;  %1712 = vmatmul.bf16.vlgmr.msra.gmra.mxu0 %v4720_v47  ;;  %v4273_v21 = vld [vmem:[#allocation5 + $0x3e4] sm:$0xf] }
  0x57   :  { %v3591_v54 = vld [vmem:[#allocation5 + $0x620] sm:$0xf]  ;;  %v4347_v57 = vld [vmem:[#allocation5 + $0x62c] sm:$0xf0]  ;;  %v3464_v6 = vor.u32 %v4315_v53, %v3463_v52  ;;  %1762 = vmatpush.bf16.msrb.mxu0 %v3336_v0  ;;  %v3305_v22 = vld [vmem:[#allocation5 + $0x3f0] sm:$0xf0] }
  0x58   :  { %v3719_v58 = vld [vmem:[#allocation5 + $0x720] sm:$0xf]  ;;  %v4379_v59 = vld [vmem:[#allocation5 + $0x72c] sm:$0xf0]  ;;  %1751 = vmatmul.bf16.vlgmr.msra.gmra.mxu3 %v4722_v51  ;;  %1725 = vmatmul.bf16.vlgmr.msra.gmra.mxu1 %v4724_v55  ;;  %v3592_v7 = vor.u32 %v4347_v57, %v3591_v54  ;;  %v4173_v25 = vld [vmem:[#allocation5 + $0xc4] sm:$0xf]  ;;  %v3308_v31 = vor.u32 %v4273_v21, %v3305_v22 }
  0x59   :  { %v3319_v60 = vld [vmem:[#allocation5 + $0x400] sm:$0xf]  ;;  %v4279_v61 = vld [vmem:[#allocation5 + $0x40c] sm:$0xf0]  ;;  %v3720_v10 = vor.u32 %v4379_v59, %v3719_v58  ;;  %1775 = vmatpush.bf16.msrb.mxu1 %v3464_v6  ;;  %v2905_v28 = vld [vmem:[#allocation5 + $0xd0] sm:$0xf0] }
  0x5a   :  { %v3447_v1 = vld [vmem:[#allocation5 + $0x500] sm:$0xf]  ;;  %v4311_v2 = vld [vmem:[#allocation5 + $0x50c] sm:$0xf0]  ;;  %v3320_v15 = vor.u32 %v4279_v61, %v3319_v60  ;;  %1788 = vmatpush.bf16.msrb.mxu2 %v3592_v7  ;;  %v4205_v29 = vld [vmem:[#allocation5 + $0x1c4] sm:$0xf]  ;;  %v2908_v38 = vor.u32 %v4173_v25, %v2905_v28 }
  0x5b   :  { %v3575_v3 = vld [vmem:[#allocation5 + $0x600] sm:$0xf]  ;;  %v4343_v8 = vld [vmem:[#allocation5 + $0x60c] sm:$0xf0]  ;;  %v3448_v19 = vor.u32 %v4311_v2, %v3447_v1  ;;  %1801 = vmatpush.bf16.msrb.mxu3 %v3720_v10  ;;  %v3033_v30 = vld [vmem:[#allocation5 + $0x1d0] sm:$0xf0] }
  0x5c   :  { %v3703_v9 = vld [vmem:[#allocation5 + $0x700] sm:$0xf]  ;;  %v4375_v11 = vld [vmem:[#allocation5 + $0x70c] sm:$0xf0]  ;;  %v3576_v20 = vor.u32 %v4343_v8, %v3575_v3  ;;  %1763 = vmatpush.bf16.msrb.mxu0 %v3320_v15  ;;  %v4237_v32 = vld [vmem:[#allocation5 + $0x2c4] sm:$0xf]  ;;  %v3036_v42 = vor.u32 %v4205_v29, %v3033_v30 }
  0x5d   :  { %v3704_v23 = vor.u32 %v4375_v11, %v3703_v9  ;;  %v3161_v33 = vld [vmem:[#allocation5 + $0x2d0] sm:$0xf0]  ;;  %v4269_v34 = vld [vmem:[#allocation5 + $0x3c4] sm:$0xf]  ;;  %1776 = vmatpush.bf16.msrb.mxu1 %v3448_v19 }
  0x5e   :  { %1789 = vmatpush.bf16.msrb.mxu2 %v3576_v20  ;;  %v3289_v35 = vld [vmem:[#allocation5 + $0x3d0] sm:$0xf0]  ;;  %v4169_v36 = vld [vmem:[#allocation5 + $0xa4] sm:$0xf]  ;;  %v3164_v43 = vor.u32 %v4237_v32, %v3161_v33 }
  0x5f   :  { %v2889_v37 = vld [vmem:[#allocation5 + $0xb0] sm:$0xf0]  ;;  %1802 = vmatpush.bf16.msrb.mxu3 %v3704_v23  ;;  %v140_v39 = vld.sshfl [vmem:[#allocation1 + $0x30] sm:$0xff pattern:$0x73625140]  ;;  %v3292_v49 = vor.u32 %v4269_v34, %v3289_v35 }
  0x60   :  { %1808 = vmatpush.bf16.msra.mxu0 %v2924_v24  ;;  %v4201_v40 = vld [vmem:[#allocation5 + $0x1a4] sm:$0xf]  ;;  %v138_v41 = vld.sshfl [vmem:[#allocation1 + $0x20] sm:$0xff pattern:$0x73625140]  ;;  %v4730_v44 = vpack.c.bf16 %v140_v39, %v140_v39  ;;  %v2892_v60 = vor.u32 %v4169_v36, %v2889_v37 }
  0x61   :  { %1821 = vmatpush.bf16.msra.mxu1 %v3052_v26  ;;  %v141_v45 = vld.sshfl [vmem:[#allocation1 + $0x38] sm:$0xff pattern:$0x73625140]  ;;  %v139_v48 = vld.sshfl [vmem:[#allocation1 + $0x28] sm:$0xff pattern:$0x73625140]  ;;  %v4732_v54 = vpack.c.bf16 %v138_v41, %v138_v41 }
  0x62   :  { %1834 = vmatpush.bf16.msra.mxu2 %v3180_v27  ;;  %v3017_v50 = vld [vmem:[#allocation5 + $0x1b0] sm:$0xf0]  ;;  %v4233_v52 = vld [vmem:[#allocation5 + $0x2a4] sm:$0xf]  ;;  %v4734_v58 = vpack.c.bf16 %v141_v45, %v141_v45  ;;  %v4736_v59 = vpack.c.bf16 %v139_v48, %v139_v48 }
  0x63   :  { %1847 = vmatpush.bf16.msra.mxu3 %v3308_v31  ;;  %v3145_v53 = vld [vmem:[#allocation5 + $0x2b0] sm:$0xf0]  ;;  %v4265_v56 = vld [vmem:[#allocation5 + $0x3a4] sm:$0xf]  ;;  %v3020_v61 = vor.u32 %v4201_v40, %v3017_v50 }
  0x64   :  { %v3273_v57 = vld [vmem:[#allocation5 + $0x3b0] sm:$0xf0]  ;;  %1809 = vmatpush.bf16.msra.mxu0 %v2908_v38  ;;  %v3148_v62 = vor.u32 %v4233_v52, %v3145_v53  ;;  %v4165_v63 = vld [vmem:[#allocation5 + $0x84] sm:$0xf] }
  0x65   :  { %1822 = vmatpush.bf16.msra.mxu1 %v3036_v42  ;;  %v2873_v0 = vld [vmem:[#allocation5 + $0x90] sm:$0xf0]  ;;  %v4197_v1 = vld [vmem:[#allocation5 + $0x184] sm:$0xf]  ;;  %v3276_v2 = vor.u32 %v4265_v56, %v3273_v57 }
  0x66   :  { %1790 = vmatmul.bf16.vlgmr.msrb.gmra.mxu2 %v4730_v44  ;;  %1764 = vmatmul.bf16.vlgmr.msrb.gmra.mxu0 %v4732_v54  ;;  %v3001_v3 = vld [vmem:[#allocation5 + $0x190] sm:$0xf0]  ;;  %v4229_v4 = vld [vmem:[#allocation5 + $0x284] sm:$0xf]  ;;  %v2876_v8 = vor.u32 %v4165_v63, %v2873_v0 }
  0x67   :  { %1835 = vmatpush.bf16.msra.mxu2 %v3164_v43  ;;  %1848 = vmatpush.bf16.msra.mxu3 %v3292_v49  ;;  %v3129_v5 = vld [vmem:[#allocation5 + $0x290] sm:$0xf0]  ;;  %v4261_v6 = vld [vmem:[#allocation5 + $0x384] sm:$0xf]  ;;  %v3004_v9 = vor.u32 %v4197_v1, %v3001_v3 }
  0x68   :  { %1803 = vmatmul.bf16.vlgmr.msrb.gmra.mxu3 %v4734_v58  ;;  %1777 = vmatmul.bf16.vlgmr.msrb.gmra.mxu1 %v4736_v59  ;;  %v3257_v7 = vld [vmem:[#allocation5 + $0x390] sm:$0xf0]  ;;  %v3132_v10 = vor.u32 %v4229_v4, %v3129_v5  ;;  %v4161_v11 = vld [vmem:[#allocation5 + $0x64] sm:$0xf] }
  0x69   :  { %1810 = vmatpush.bf16.msra.mxu0 %v2892_v60  ;;  %1823 = vmatpush.bf16.msra.mxu1 %v3020_v61  ;;  %v2857_v12 = vld [vmem:[#allocation5 + $0x70] sm:$0xf0]  ;;  %v4193_v13 = vld [vmem:[#allocation5 + $0x164] sm:$0xf]  ;;  %v3260_v14 = vor.u32 %v4261_v6, %v3257_v7 }
  0x6a   :  { %v2985_v15 = vld [vmem:[#allocation5 + $0x170] sm:$0xf0]  ;;  %v4225_v16 = vld [vmem:[#allocation5 + $0x264] sm:$0xf]  ;;  %v2860_v20 = vor.u32 %v4161_v11, %v2857_v12 }
  0x6b   :  { %1836 = vmatpush.bf16.msra.mxu2 %v3148_v62  ;;  %1849 = vmatpush.bf16.msra.mxu3 %v3276_v2  ;;  %v3113_v17 = vld [vmem:[#allocation5 + $0x270] sm:$0xf0]  ;;  %v4257_v18 = vld [vmem:[#allocation5 + $0x364] sm:$0xf]  ;;  %v2988_v21 = vor.u32 %v4193_v13, %v2985_v15 }
  0x6c   :  { %v3241_v19 = vld [vmem:[#allocation5 + $0x370] sm:$0xf0]  ;;  %v3116_v22 = vor.u32 %v4225_v16, %v3113_v17  ;;  %v4157_v23 = vld [vmem:[#allocation5 + $0x44] sm:$0xf] }
  0x6d   :  { %1811 = vmatpush.bf16.msra.mxu0 %v2876_v8  ;;  %1824 = vmatpush.bf16.msra.mxu1 %v3004_v9  ;;  %v2841_v24 = vld [vmem:[#allocation5 + $0x50] sm:$0xf0]  ;;  %v4189_v25 = vld [vmem:[#allocation5 + $0x144] sm:$0xf]  ;;  %v3244_v26 = vor.u32 %v4257_v18, %v3241_v19 }
  0x6e   :  { %v2969_v27 = vld [vmem:[#allocation5 + $0x150] sm:$0xf0]  ;;  %v4221_v28 = vld [vmem:[#allocation5 + $0x244] sm:$0xf]  ;;  %v2844_v32 = vor.u32 %v4157_v23, %v2841_v24 }
  0x6f   :  { %1837 = vmatpush.bf16.msra.mxu2 %v3132_v10  ;;  %1850 = vmatpush.bf16.msra.mxu3 %v3260_v14  ;;  %v3097_v29 = vld [vmem:[#allocation5 + $0x250] sm:$0xf0]  ;;  %v4253_v30 = vld [vmem:[#allocation5 + $0x344] sm:$0xf]  ;;  %v2972_v33 = vor.u32 %v4189_v25, %v2969_v27 }
  0x70   :  { %v3225_v31 = vld [vmem:[#allocation5 + $0x350] sm:$0xf0]  ;;  %v3100_v34 = vor.u32 %v4221_v28, %v3097_v29  ;;  %v4153_v35 = vld [vmem:[#allocation5 + $0x24] sm:$0xf] }
  0x71   :  { %1812 = vmatpush.bf16.msra.mxu0 %v2860_v20  ;;  %1825 = vmatpush.bf16.msra.mxu1 %v2988_v21  ;;  %v2825_v36 = vld [vmem:[#allocation5 + $0x30] sm:$0xf0]  ;;  %v4185_v37 = vld [vmem:[#allocation5 + $0x124] sm:$0xf]  ;;  %v3228_v38 = vor.u32 %v4253_v30, %v3225_v31 }
  0x72   :  { %v2953_v39 = vld [vmem:[#allocation5 + $0x130] sm:$0xf0]  ;;  %v4217_v40 = vld [vmem:[#allocation5 + $0x224] sm:$0xf]  ;;  %v2828_v45 = vor.u32 %v4153_v35, %v2825_v36 }
  0x73   :  { %1838 = vmatpush.bf16.msra.mxu2 %v3116_v22  ;;  %1851 = vmatpush.bf16.msra.mxu3 %v3244_v26  ;;  %v3081_v41 = vld [vmem:[#allocation5 + $0x230] sm:$0xf0]  ;;  %v4249_v42 = vld [vmem:[#allocation5 + $0x324] sm:$0xf]  ;;  %v2956_v50 = vor.u32 %v4185_v37, %v2953_v39 }
  0x74   :  { %v3209_v43 = vld [vmem:[#allocation5 + $0x330] sm:$0xf0]  ;;  %v4149_v48 = vld [vmem:[#allocation5 + $0x4] sm:$0xf]  ;;  %v3084_v52 = vor.u32 %v4217_v40, %v3081_v41 }
  0x75   :  { %1813 = vmatpush.bf16.msra.mxu0 %v2844_v32  ;;  %v2809_v49 = vld [vmem:[#allocation5 + $0x10] sm:$0xf0]  ;;  %1826 = vmatpush.bf16.msra.mxu1 %v2972_v33  ;;  %v4181_v53 = vld [vmem:[#allocation5 + $0x104] sm:$0xf]  ;;  %v3212_v60 = vor.u32 %v4249_v42, %v3209_v43 }
  0x76   :  { %v2937_v56 = vld [vmem:[#allocation5 + $0x110] sm:$0xf0]  ;;  %v4213_v57 = vld [vmem:[#allocation5 + $0x204] sm:$0xf]  ;;  %v2812_v3 = vor.u32 %v4149_v48, %v2809_v49 }
  0x77   :  { %1839 = vmatpush.bf16.msra.mxu2 %v3100_v34  ;;  %1852 = vmatpush.bf16.msra.mxu3 %v3228_v38  ;;  %v3065_v61 = vld [vmem:[#allocation5 + $0x210] sm:$0xf0]  ;;  %v4245_v62 = vld [vmem:[#allocation5 + $0x304] sm:$0xf]  ;;  %v2940_v7 = vor.u32 %v4181_v53, %v2937_v56 }
  0x78   :  { %v3193_v63 = vld [vmem:[#allocation5 + $0x310] sm:$0xf0]  ;;  %v4305_v0 = vld [vmem:[#allocation5 + $0x4e4] sm:$0xf]  ;;  %v3068_v8 = vor.u32 %v4213_v57, %v3065_v61 }
  0x79   :  { %v3433_v1 = vld [vmem:[#allocation5 + $0x4f0] sm:$0xf0]  ;;  %v4337_v2 = vld [vmem:[#allocation5 + $0x5e4] sm:$0xf]  ;;  %1814 = vmatpush.bf16.msra.mxu0 %v2828_v45  ;;  %1827 = vmatpush.bf16.msra.mxu1 %v2956_v50  ;;  %v3196_v11 = vor.u32 %v4245_v62, %v3193_v63 }
  0x7a   :  { %v3561_v4 = vld [vmem:[#allocation5 + $0x5f0] sm:$0xf0]  ;;  %v4369_v5 = vld [vmem:[#allocation5 + $0x6e4] sm:$0xf]  ;;  %v3436_v12 = vor.u32 %v4305_v0, %v3433_v1 }
  0x7b   :  { %v3689_v6 = vld [vmem:[#allocation5 + $0x6f0] sm:$0xf0]  ;;  %1840 = vmatpush.bf16.msra.mxu2 %v3084_v52  ;;  %v4401_v9 = vld [vmem:[#allocation5 + $0x7e4] sm:$0xf]  ;;  %1853 = vmatpush.bf16.msra.mxu3 %v3212_v60  ;;  %v3564_v13 = vor.u32 %v4337_v2, %v3561_v4 }
  0x7c   :  { %v3817_v10 = vld [vmem:[#allocation5 + $0x7f0] sm:$0xf0]  ;;  %v3692_v14 = vor.u32 %v4369_v5, %v3689_v6  ;;  %v4301_v15 = vld [vmem:[#allocation5 + $0x4c4] sm:$0xf] }
  0x7d   :  { %v3417_v16 = vld [vmem:[#allocation5 + $0x4d0] sm:$0xf0]  ;;  %v4333_v17 = vld [vmem:[#allocation5 + $0x5c4] sm:$0xf]  ;;  %1815 = vmatpush.bf16.msra.mxu0 %v2812_v3  ;;  %v3820_v18 = vor.u32 %v4401_v9, %v3817_v10  ;;  %1828 = vmatpush.bf16.msra.mxu1 %v2940_v7 }
  0x7e   :  { %v3545_v19 = vld [vmem:[#allocation5 + $0x5d0] sm:$0xf0]  ;;  %v4365_v20 = vld [vmem:[#allocation5 + $0x6c4] sm:$0xf]  ;;  %v3420_v24 = vor.u32 %v4301_v15, %v3417_v16 }
  0x7f   :  { %v3673_v21 = vld [vmem:[#allocation5 + $0x6d0] sm:$0xf0]  ;;  %1841 = vmatpush.bf16.msra.mxu2 %v3068_v8  ;;  %v4397_v22 = vld [vmem:[#allocation5 + $0x7c4] sm:$0xf]  ;;  %1854 = vmatpush.bf16.msra.mxu3 %v3196_v11  ;;  %v3548_v25 = vor.u32 %v4333_v17, %v3545_v19 }
  0x80   :  { %v3801_v23 = vld [vmem:[#allocation5 + $0x7d0] sm:$0xf0]  ;;  %v3676_v26 = vor.u32 %v4365_v20, %v3673_v21  ;;  %v4297_v27 = vld [vmem:[#allocation5 + $0x4a4] sm:$0xf]  ;;  %1816 = vmatmul.bf16.vlgmr.msra.gmra.mxu0 %v4720_v47  ;;  %1829 = vmatmul.bf16.vlgmr.msra.gmra.mxu1 %v4724_v55 }
  0x81   :  { %1860 = vmatpush.bf16.msrb.mxu0 %v3436_v12  ;;  %1873 = vmatpush.bf16.msrb.mxu1 %v3564_v13  ;;  %v3401_v28 = vld [vmem:[#allocation5 + $0x4b0] sm:$0xf0]  ;;  %v4329_v29 = vld [vmem:[#allocation5 + $0x5a4] sm:$0xf]  ;;  %v3804_v30 = vor.u32 %v4397_v22, %v3801_v23 }
  0x82   :  { %v3529_v31 = vld [vmem:[#allocation5 + $0x5b0] sm:$0xf0]  ;;  %v4361_v32 = vld [vmem:[#allocation5 + $0x6a4] sm:$0xf]  ;;  %1842 = vmatmul.bf16.vlgmr.msra.gmra.mxu2 %v4718_v46  ;;  %1855 = vmatmul.bf16.vlgmr.msra.gmra.mxu3 %v4722_v51  ;;  %v3404_v36 = vor.u32 %v4297_v27, %v3401_v28 }
  0x83   :  { %1886 = vmatpush.bf16.msrb.mxu2 %v3692_v14  ;;  %1899 = vmatpush.bf16.msrb.mxu3 %v3820_v18  ;;  %v3657_v33 = vld [vmem:[#allocation5 + $0x6b0] sm:$0xf0]  ;;  %v4393_v34 = vld [vmem:[#allocation5 + $0x7a4] sm:$0xf]  ;;  %v3532_v37 = vor.u32 %v4329_v29, %v3529_v31 }
  0x84   :  { %v3785_v35 = vld [vmem:[#allocation5 + $0x7b0] sm:$0xf0]  ;;  %v3660_v38 = vor.u32 %v4361_v32, %v3657_v33  ;;  %v4293_v39 = vld [vmem:[#allocation5 + $0x484] sm:$0xf] }
  0x85   :  { %1861 = vmatpush.bf16.msrb.mxu0 %v3420_v24  ;;  %1874 = vmatpush.bf16.msrb.mxu1 %v3548_v25  ;;  %v3385_v40 = vld [vmem:[#allocation5 + $0x490] sm:$0xf0]  ;;  %v4325_v41 = vld [vmem:[#allocation5 + $0x584] sm:$0xf]  ;;  %v3788_v42 = vor.u32 %v4393_v34, %v3785_v35 }
  0x86   :  { %v3513_v43 = vld [vmem:[#allocation5 + $0x590] sm:$0xf0]  ;;  %v4357_v45 = vld [vmem:[#allocation5 + $0x684] sm:$0xf]  ;;  %v3388_v52 = vor.u32 %v4293_v39, %v3385_v40  ;;  %v2927_v40 = vld [vmem:[#allocation5 + $0xe8] sm:$0xf] }
  0x87   :  { %1887 = vmatpush.bf16.msrb.mxu2 %v3676_v26  ;;  %1900 = vmatpush.bf16.msrb.mxu3 %v3804_v30  ;;  %v3641_v48 = vld [vmem:[#allocation5 + $0x690] sm:$0xf0]  ;;  %v4389_v49 = vld [vmem:[#allocation5 + $0x784] sm:$0xf]  ;;  %v3516_v53 = vor.u32 %v4325_v41, %v3513_v43  ;;  %v4180_v41 = vld [vmem:[#allocation5 + $0xf4] sm:$0xf0] }
  0x88   :  { %v3769_v50 = vld [vmem:[#allocation5 + $0x790] sm:$0xf0]  ;;  %v3644_v56 = vor.u32 %v4357_v45, %v3641_v48  ;;  %v4289_v57 = vld [vmem:[#allocation5 + $0x464] sm:$0xf]  ;;  %v4212_v45 = vld [vmem:[#allocation5 + $0x1f4] sm:$0xf0] }
  0x89   :  { %1862 = vmatpush.bf16.msrb.mxu0 %v3404_v36  ;;  %1875 = vmatpush.bf16.msrb.mxu1 %v3532_v37  ;;  %v3369_v60 = vld [vmem:[#allocation5 + $0x470] sm:$0xf0]  ;;  %v4321_v61 = vld [vmem:[#allocation5 + $0x564] sm:$0xf]  ;;  %v3772_v62 = vor.u32 %v4389_v49, %v3769_v50  ;;  %v3183_v48 = vld [vmem:[#allocation5 + $0x2e8] sm:$0xf] }
  0x8a   :  { %v3497_v63 = vld [vmem:[#allocation5 + $0x570] sm:$0xf0]  ;;  %v4353_v0 = vld [vmem:[#allocation5 + $0x664] sm:$0xf]  ;;  %v3372_v4 = vor.u32 %v4289_v57, %v3369_v60  ;;  %v4244_v49 = vld [vmem:[#allocation5 + $0x2f4] sm:$0xf0]  ;;  %v2928_v60 = vor.u32 %v4180_v41, %v2927_v40 }
  0x8b   :  { %1888 = vmatpush.bf16.msrb.mxu2 %v3660_v38  ;;  %1901 = vmatpush.bf16.msrb.mxu3 %v3788_v42  ;;  %v3625_v1 = vld [vmem:[#allocation5 + $0x670] sm:$0xf0]  ;;  %v4385_v2 = vld [vmem:[#allocation5 + $0x764] sm:$0xf]  ;;  %v3500_v5 = vor.u32 %v4321_v61, %v3497_v63  ;;  %v3055_v42 = vld [vmem:[#allocation5 + $0x1e8] sm:$0xf] }
  0x8c   :  { %v3753_v3 = vld [vmem:[#allocation5 + $0x770] sm:$0xf0]  ;;  %v3628_v6 = vor.u32 %v4353_v0, %v3625_v1  ;;  %v4285_v7 = vld [vmem:[#allocation5 + $0x444] sm:$0xf]  ;;  %v3056_v61 = vor.u32 %v4212_v45, %v3055_v42  ;;  %v2911_v63 = vld [vmem:[#allocation5 + $0xc8] sm:$0xf] }
  0x8d   :  { %1863 = vmatpush.bf16.msrb.mxu0 %v3388_v52  ;;  %1876 = vmatpush.bf16.msrb.mxu1 %v3516_v53  ;;  %v3353_v8 = vld [vmem:[#allocation5 + $0x450] sm:$0xf0]  ;;  %v4317_v9 = vld [vmem:[#allocation5 + $0x544] sm:$0xf]  ;;  %v3756_v10 = vor.u32 %v4385_v2, %v3753_v3  ;;  %v3311_v53 = vld [vmem:[#allocation5 + $0x3e8] sm:$0xf] }
  0x8e   :  { %v3481_v11 = vld [vmem:[#allocation5 + $0x550] sm:$0xf0]  ;;  %v4349_v12 = vld [vmem:[#allocation5 + $0x644] sm:$0xf]  ;;  %v3356_v16 = vor.u32 %v4285_v7, %v3353_v8  ;;  %v4176_v0 = vld [vmem:[#allocation5 + $0xd4] sm:$0xf0] }
  0x8f   :  { %1889 = vmatpush.bf16.msrb.mxu2 %v3644_v56  ;;  %1902 = vmatpush.bf16.msrb.mxu3 %v3772_v62  ;;  %v3609_v13 = vld [vmem:[#allocation5 + $0x650] sm:$0xf0]  ;;  %v4381_v14 = vld [vmem:[#allocation5 + $0x744] sm:$0xf]  ;;  %v3484_v17 = vor.u32 %v4317_v9, %v3481_v11  ;;  %v4276_v56 = vld [vmem:[#allocation5 + $0x3f4] sm:$0xf0]  ;;  %v3184_v62 = vor.u32 %v4244_v49, %v3183_v48  ;;  %v2912_v8 = vor.u32 %v4176_v0, %v2911_v63 }
  0x90   :  { %v3737_v15 = vld [vmem:[#allocation5 + $0x750] sm:$0xf0]  ;;  %v3612_v18 = vor.u32 %v4349_v12, %v3609_v13  ;;  %v4281_v19 = vld [vmem:[#allocation5 + $0x424] sm:$0xf]  ;;  %v3039_v1 = vld [vmem:[#allocation5 + $0x1c8] sm:$0xf]  ;;  %v3312_v2 = vor.u32 %v4276_v56, %v3311_v53 }
  0x91   :  { %1864 = vmatpush.bf16.msrb.mxu0 %v3372_v4  ;;  %1877 = vmatpush.bf16.msrb.mxu1 %v3500_v5  ;;  %v3337_v20 = vld [vmem:[#allocation5 + $0x430] sm:$0xf0]  ;;  %v4313_v21 = vld [vmem:[#allocation5 + $0x524] sm:$0xf]  ;;  %v3740_v22 = vor.u32 %v4381_v14, %v3737_v15  ;;  %v4208_v3 = vld [vmem:[#allocation5 + $0x1d4] sm:$0xf0] }
  0x92   :  { %v3465_v23 = vld [vmem:[#allocation5 + $0x530] sm:$0xf0]  ;;  %v4345_v24 = vld [vmem:[#allocation5 + $0x624] sm:$0xf]  ;;  %v3340_v28 = vor.u32 %v4281_v19, %v3337_v20  ;;  %v3167_v4 = vld [vmem:[#allocation5 + $0x2c8] sm:$0xf]  ;;  %v3040_v9 = vor.u32 %v4208_v3, %v3039_v1 }
  0x93   :  { %1890 = vmatpush.bf16.msrb.mxu2 %v3628_v6  ;;  %1903 = vmatpush.bf16.msrb.mxu3 %v3756_v10  ;;  %v3593_v25 = vld [vmem:[#allocation5 + $0x630] sm:$0xf0]  ;;  %v4377_v26 = vld [vmem:[#allocation5 + $0x724] sm:$0xf]  ;;  %v3468_v31 = vor.u32 %v4313_v21, %v3465_v23  ;;  %v4240_v5 = vld [vmem:[#allocation5 + $0x2d4] sm:$0xf0] }
  0x94   :  { %v3721_v27 = vld [vmem:[#allocation5 + $0x730] sm:$0xf0]  ;;  %v4277_v29 = vld [vmem:[#allocation5 + $0x404] sm:$0xf]  ;;  %v3596_v32 = vor.u32 %v4345_v24, %v3593_v25  ;;  %v3295_v6 = vld [vmem:[#allocation5 + $0x3c8] sm:$0xf]  ;;  %v3168_v10 = vor.u32 %v4240_v5, %v3167_v4 }
  0x95   :  { %1865 = vmatpush.bf16.msrb.mxu0 %v3356_v16  ;;  %v3321_v30 = vld [vmem:[#allocation5 + $0x410] sm:$0xf0]  ;;  %1878 = vmatpush.bf16.msrb.mxu1 %v3484_v17  ;;  %v4309_v33 = vld [vmem:[#allocation5 + $0x504] sm:$0xf]  ;;  %v3724_v36 = vor.u32 %v4377_v26, %v3721_v27  ;;  %v4272_v7 = vld [vmem:[#allocation5 + $0x3d4] sm:$0xf0] }
  0x96   :  { %v3449_v34 = vld [vmem:[#allocation5 + $0x510] sm:$0xf0]  ;;  %v4341_v35 = vld [vmem:[#allocation5 + $0x604] sm:$0xf]  ;;  %v3324_v43 = vor.u32 %v4277_v29, %v3321_v30  ;;  %v2895_v11 = vld [vmem:[#allocation5 + $0xa8] sm:$0xf]  ;;  %v3296_v14 = vor.u32 %v4272_v7, %v3295_v6 }
  0x97   :  { %1891 = vmatpush.bf16.msrb.mxu2 %v3612_v18  ;;  %1904 = vmatpush.bf16.msrb.mxu3 %v3740_v22  ;;  %v3577_v37 = vld [vmem:[#allocation5 + $0x610] sm:$0xf0]  ;;  %v4373_v38 = vld [vmem:[#allocation5 + $0x704] sm:$0xf]  ;;  %v3452_v50 = vor.u32 %v4309_v33, %v3449_v34  ;;  %v4172_v12 = vld [vmem:[#allocation5 + $0xb4] sm:$0xf0] }
  0x98   :  { %v3705_v39 = vld [vmem:[#allocation5 + $0x710] sm:$0xf0]  ;;  %v3580_v52 = vor.u32 %v4341_v35, %v3577_v37  ;;  %v3023_v13 = vld [vmem:[#allocation5 + $0x1a8] sm:$0xf]  ;;  %v4204_v15 = vld [vmem:[#allocation5 + $0x1b4] sm:$0xf0]  ;;  %v2896_v20 = vor.u32 %v4172_v12, %v2895_v11 }
  0x99   :  { %1866 = vmatpush.bf16.msrb.mxu0 %v3340_v28  ;;  %1879 = vmatpush.bf16.msrb.mxu1 %v3468_v31  ;;  %v3708_v57 = vor.u32 %v4373_v38, %v3705_v39  ;;  %v3151_v16 = vld [vmem:[#allocation5 + $0x2a8] sm:$0xf]  ;;  %v4236_v17 = vld [vmem:[#allocation5 + $0x2b4] sm:$0xf0]  ;;  %v3024_v21 = vor.u32 %v4204_v15, %v3023_v13 }
  0x9a   :  { %v3279_v18 = vld [vmem:[#allocation5 + $0x3a8] sm:$0xf]  ;;  %v4268_v19 = vld [vmem:[#allocation5 + $0x3b4] sm:$0xf0]  ;;  %v3152_v22 = vor.u32 %v4236_v17, %v3151_v16 }
  0x9b   :  { %1892 = vmatpush.bf16.msrb.mxu2 %v3596_v32  ;;  %1905 = vmatpush.bf16.msrb.mxu3 %v3724_v36  ;;  %v2879_v23 = vld [vmem:[#allocation5 + $0x88] sm:$0xf]  ;;  %v4168_v24 = vld [vmem:[#allocation5 + $0x94] sm:$0xf0]  ;;  %v3280_v26 = vor.u32 %v4268_v19, %v3279_v18 }
  0x9c   :  { %v3007_v25 = vld [vmem:[#allocation5 + $0x188] sm:$0xf]  ;;  %v4200_v27 = vld [vmem:[#allocation5 + $0x194] sm:$0xf0]  ;;  %v2880_v32 = vor.u32 %v4168_v24, %v2879_v23 }
  0x9d   :  { %1867 = vmatpush.bf16.msrb.mxu0 %v3324_v43  ;;  %1880 = vmatpush.bf16.msrb.mxu1 %v3452_v50  ;;  %v3135_v28 = vld [vmem:[#allocation5 + $0x288] sm:$0xf]  ;;  %v4232_v29 = vld [vmem:[#allocation5 + $0x294] sm:$0xf0]  ;;  %v3008_v33 = vor.u32 %v4200_v27, %v3007_v25 }
  0x9e   :  { %v3263_v30 = vld [vmem:[#allocation5 + $0x388] sm:$0xf]  ;;  %v4264_v31 = vld [vmem:[#allocation5 + $0x394] sm:$0xf0]  ;;  %v3136_v34 = vor.u32 %v4232_v29, %v3135_v28 }
  0x9f   :  { %1893 = vmatpush.bf16.msrb.mxu2 %v3580_v52  ;;  %1906 = vmatpush.bf16.msrb.mxu3 %v3708_v57  ;;  %v2863_v35 = vld [vmem:[#allocation5 + $0x68] sm:$0xf]  ;;  %v4164_v36 = vld [vmem:[#allocation5 + $0x74] sm:$0xf0]  ;;  %v3264_v38 = vor.u32 %v4264_v31, %v3263_v30 }
  0xa0   :  { %1868 = vmatmul.bf16.vlgmr.msrb.gmra.mxu0 %v4732_v54  ;;  %1881 = vmatmul.bf16.vlgmr.msrb.gmra.mxu1 %v4736_v59  ;;  %v2991_v37 = vld [vmem:[#allocation5 + $0x168] sm:$0xf]  ;;  %v4196_v39 = vld [vmem:[#allocation5 + $0x174] sm:$0xf0]  ;;  %v2864_v45 = vor.u32 %v4164_v36, %v2863_v35 }
  0xa1   :  { %1912 = vmatpush.bf16.msra.mxu0 %v2928_v60  ;;  %1925 = vmatpush.bf16.msra.mxu1 %v3056_v61  ;;  %v3119_v40 = vld [vmem:[#allocation5 + $0x268] sm:$0xf]  ;;  %v4228_v41 = vld [vmem:[#allocation5 + $0x274] sm:$0xf0]  ;;  %v2992_v48 = vor.u32 %v4196_v39, %v2991_v37 }
  0xa2   :  { %1894 = vmatmul.bf16.vlgmr.msrb.gmra.mxu2 %v4730_v44  ;;  %1907 = vmatmul.bf16.vlgmr.msrb.gmra.mxu3 %v4734_v58  ;;  %v3247_v42 = vld [vmem:[#allocation5 + $0x368] sm:$0xf]  ;;  %v4260_v43 = vld [vmem:[#allocation5 + $0x374] sm:$0xf0]  ;;  %v3120_v49 = vor.u32 %v4228_v41, %v3119_v40 }
  0xa3   :  { %1938 = vmatpush.bf16.msra.mxu2 %v3184_v62  ;;  %1951 = vmatpush.bf16.msra.mxu3 %v3312_v2  ;;  %v2847_v50 = vld [vmem:[#allocation5 + $0x48] sm:$0xf]  ;;  %v4160_v52 = vld [vmem:[#allocation5 + $0x54] sm:$0xf0]  ;;  %v3248_v56 = vor.u32 %v4260_v43, %v3247_v42 }
  0xa4   :  { %v2975_v53 = vld [vmem:[#allocation5 + $0x148] sm:$0xf]  ;;  %v4192_v57 = vld [vmem:[#allocation5 + $0x154] sm:$0xf0]  ;;  %v2848_v0 = vor.u32 %v4160_v52, %v2847_v50 }
  0xa5   :  { %1913 = vmatpush.bf16.msra.mxu0 %v2912_v8  ;;  %1926 = vmatpush.bf16.msra.mxu1 %v3040_v9  ;;  %v3103_v60 = vld [vmem:[#allocation5 + $0x248] sm:$0xf]  ;;  %v4224_v61 = vld [vmem:[#allocation5 + $0x254] sm:$0xf0]  ;;  %v2976_v1 = vor.u32 %v4192_v57, %v2975_v53 }
  0xa6   :  { %v3231_v62 = vld [vmem:[#allocation5 + $0x348] sm:$0xf]  ;;  %v4256_v63 = vld [vmem:[#allocation5 + $0x354] sm:$0xf0]  ;;  %v3104_v2 = vor.u32 %v4224_v61, %v3103_v60 }
  0xa7   :  { %1939 = vmatpush.bf16.msra.mxu2 %v3168_v10  ;;  %1952 = vmatpush.bf16.msra.mxu3 %v3296_v14  ;;  %v2831_v3 = vld [vmem:[#allocation5 + $0x28] sm:$0xf]  ;;  %v4156_v4 = vld [vmem:[#allocation5 + $0x34] sm:$0xf0]  ;;  %v3232_v6 = vor.u32 %v4256_v63, %v3231_v62 }
  0xa8   :  { %v2959_v5 = vld [vmem:[#allocation5 + $0x128] sm:$0xf]  ;;  %v4188_v7 = vld [vmem:[#allocation5 + $0x134] sm:$0xf0]  ;;  %v2832_v12 = vor.u32 %v4156_v4, %v2831_v3 }
  0xa9   :  { %1914 = vmatpush.bf16.msra.mxu0 %v2896_v20  ;;  %1927 = vmatpush.bf16.msra.mxu1 %v3024_v21  ;;  %v3087_v8 = vld [vmem:[#allocation5 + $0x228] sm:$0xf]  ;;  %v4220_v9 = vld [vmem:[#allocation5 + $0x234] sm:$0xf0]  ;;  %v2960_v15 = vor.u32 %v4188_v7, %v2959_v5 }
  0xaa   :  { %v3215_v10 = vld [vmem:[#allocation5 + $0x328] sm:$0xf]  ;;  %v4252_v11 = vld [vmem:[#allocation5 + $0x334] sm:$0xf0]  ;;  %v3088_v16 = vor.u32 %v4220_v9, %v3087_v8 }
  0xab   :  { %1940 = vmatpush.bf16.msra.mxu2 %v3152_v22  ;;  %1953 = vmatpush.bf16.msra.mxu3 %v3280_v26  ;;  %v2815_v13 = vld [vmem:[#allocation5 + $0x8] sm:$0xf]  ;;  %v4152_v14 = vld [vmem:[#allocation5 + $0x14] sm:$0xf0]  ;;  %v3216_v20 = vor.u32 %v4252_v11, %v3215_v10 }
  0xac   :  { %v2943_v17 = vld [vmem:[#allocation5 + $0x108] sm:$0xf]  ;;  %v4184_v18 = vld [vmem:[#allocation5 + $0x114] sm:$0xf0]  ;;  %v2816_v27 = vor.u32 %v4152_v14, %v2815_v13 }
  0xad   :  { %1915 = vmatpush.bf16.msra.mxu0 %v2880_v32  ;;  %1928 = vmatpush.bf16.msra.mxu1 %v3008_v33  ;;  %v3071_v19 = vld [vmem:[#allocation5 + $0x208] sm:$0xf]  ;;  %v4216_v21 = vld [vmem:[#allocation5 + $0x214] sm:$0xf0]  ;;  %v2944_v31 = vor.u32 %v4184_v18, %v2943_v17 }
  0xae   :  { %v3199_v22 = vld [vmem:[#allocation5 + $0x308] sm:$0xf]  ;;  %v4248_v23 = vld [vmem:[#allocation5 + $0x314] sm:$0xf0]  ;;  %v3072_v32 = vor.u32 %v4216_v21, %v3071_v19 }
  0xaf   :  { %1941 = vmatpush.bf16.msra.mxu2 %v3136_v34  ;;  %1954 = vmatpush.bf16.msra.mxu3 %v3264_v38  ;;  %v3439_v24 = vld [vmem:[#allocation5 + $0x4e8] sm:$0xf]  ;;  %v4308_v25 = vld [vmem:[#allocation5 + $0x4f4] sm:$0xf0]  ;;  %v3200_v35 = vor.u32 %v4248_v23, %v3199_v22 }
  0xb0   :  { %v3567_v26 = vld [vmem:[#allocation5 + $0x5e8] sm:$0xf]  ;;  %v4340_v28 = vld [vmem:[#allocation5 + $0x5f4] sm:$0xf0]  ;;  %v3440_v36 = vor.u32 %v4308_v25, %v3439_v24 }
  0xb1   :  { %1916 = vmatpush.bf16.msra.mxu0 %v2864_v45  ;;  %1929 = vmatpush.bf16.msra.mxu1 %v2992_v48  ;;  %v3695_v29 = vld [vmem:[#allocation5 + $0x6e8] sm:$0xf]  ;;  %v4372_v30 = vld [vmem:[#allocation5 + $0x6f4] sm:$0xf0]  ;;  %v3568_v37 = vor.u32 %v4340_v28, %v3567_v26 }
  0xb2   :  { %v3823_v33 = vld [vmem:[#allocation5 + $0x7e8] sm:$0xf]  ;;  %v4404_v34 = vld [vmem:[#allocation5 + $0x7f4] sm:$0xf0]  ;;  %v3696_v38 = vor.u32 %v4372_v30, %v3695_v29 }
  0xb3   :  { %1942 = vmatpush.bf16.msra.mxu2 %v3120_v49  ;;  %1955 = vmatpush.bf16.msra.mxu3 %v3248_v56  ;;  %v3423_v39 = vld [vmem:[#allocation5 + $0x4c8] sm:$0xf]  ;;  %v4304_v40 = vld [vmem:[#allocation5 + $0x4d4] sm:$0xf0]  ;;  %v3824_v42 = vor.u32 %v4404_v34, %v3823_v33 }
  0xb4   :  { %v3551_v41 = vld [vmem:[#allocation5 + $0x5c8] sm:$0xf]  ;;  %v4336_v43 = vld [vmem:[#allocation5 + $0x5d4] sm:$0xf0]  ;;  %v3424_v52 = vor.u32 %v4304_v40, %v3423_v39 }
  0xb5   :  { %1917 = vmatpush.bf16.msra.mxu0 %v2848_v0  ;;  %1930 = vmatpush.bf16.msra.mxu1 %v2976_v1  ;;  %v3679_v45 = vld [vmem:[#allocation5 + $0x6c8] sm:$0xf]  ;;  %v4368_v48 = vld [vmem:[#allocation5 + $0x6d4] sm:$0xf0]  ;;  %v3552_v53 = vor.u32 %v4336_v43, %v3551_v41 }
  0xb6   :  { %v3807_v49 = vld [vmem:[#allocation5 + $0x7c8] sm:$0xf]  ;;  %v4400_v50 = vld [vmem:[#allocation5 + $0x7d4] sm:$0xf0]  ;;  %v3680_v56 = vor.u32 %v4368_v48, %v3679_v45 }
  0xb7   :  { %1943 = vmatpush.bf16.msra.mxu2 %v3104_v2  ;;  %1956 = vmatpush.bf16.msra.mxu3 %v3232_v6  ;;  %v3407_v57 = vld [vmem:[#allocation5 + $0x4a8] sm:$0xf]  ;;  %v4300_v60 = vld [vmem:[#allocation5 + $0x4b4] sm:$0xf0]  ;;  %v3808_v62 = vor.u32 %v4400_v50, %v3807_v49 }
  0xb8   :  { %v3535_v61 = vld [vmem:[#allocation5 + $0x5a8] sm:$0xf]  ;;  %v4332_v63 = vld [vmem:[#allocation5 + $0x5b4] sm:$0xf0]  ;;  %v3408_v4 = vor.u32 %v4300_v60, %v3407_v57 }
  0xb9   :  { %1918 = vmatpush.bf16.msra.mxu0 %v2832_v12  ;;  %1931 = vmatpush.bf16.msra.mxu1 %v2960_v15  ;;  %v3663_v0 = vld [vmem:[#allocation5 + $0x6a8] sm:$0xf]  ;;  %v4364_v1 = vld [vmem:[#allocation5 + $0x6b4] sm:$0xf0]  ;;  %v3536_v5 = vor.u32 %v4332_v63, %v3535_v61 }
  0xba   :  { %v3791_v2 = vld [vmem:[#allocation5 + $0x7a8] sm:$0xf]  ;;  %v4396_v3 = vld [vmem:[#allocation5 + $0x7b4] sm:$0xf0]  ;;  %v3664_v6 = vor.u32 %v4364_v1, %v3663_v0 }
  0xbb   :  { %1944 = vmatpush.bf16.msra.mxu2 %v3088_v16  ;;  %1957 = vmatpush.bf16.msra.mxu3 %v3216_v20  ;;  %v3391_v7 = vld [vmem:[#allocation5 + $0x488] sm:$0xf]  ;;  %v4296_v8 = vld [vmem:[#allocation5 + $0x494] sm:$0xf0]  ;;  %v3792_v10 = vor.u32 %v4396_v3, %v3791_v2 }
  0xbc   :  { %v3519_v9 = vld [vmem:[#allocation5 + $0x588] sm:$0xf]  ;;  %v4328_v11 = vld [vmem:[#allocation5 + $0x594] sm:$0xf0]  ;;  %v3392_v16 = vor.u32 %v4296_v8, %v3391_v7 }
  0xbd   :  { %1919 = vmatpush.bf16.msra.mxu0 %v2816_v27  ;;  %1932 = vmatpush.bf16.msra.mxu1 %v2944_v31  ;;  %v3647_v12 = vld [vmem:[#allocation5 + $0x688] sm:$0xf]  ;;  %v4360_v13 = vld [vmem:[#allocation5 + $0x694] sm:$0xf0]  ;;  %v3520_v17 = vor.u32 %v4328_v11, %v3519_v9  ;;  %v2929_v11 = vld [vmem:[#allocation5 + $0xf8] sm:$0xf0] }
  0xbe   :  { %v3775_v14 = vld [vmem:[#allocation5 + $0x788] sm:$0xf]  ;;  %v4392_v15 = vld [vmem:[#allocation5 + $0x794] sm:$0xf0]  ;;  %v3648_v18 = vor.u32 %v4360_v13, %v3647_v12  ;;  %v4210_v12 = vld [vmem:[#allocation5 + $0x1ec] sm:$0xf] }
  0xbf   :  { %1945 = vmatpush.bf16.msra.mxu2 %v3072_v32  ;;  %1958 = vmatpush.bf16.msra.mxu3 %v3200_v35  ;;  %v3375_v19 = vld [vmem:[#allocation5 + $0x468] sm:$0xf]  ;;  %v4292_v20 = vld [vmem:[#allocation5 + $0x474] sm:$0xf0]  ;;  %v3776_v22 = vor.u32 %v4392_v15, %v3775_v14  ;;  %v3057_v14 = vld [vmem:[#allocation5 + $0x1f8] sm:$0xf0] }
  0xc0   :  { %1920 = vmatmul.bf16.vlgmr.msra.gmra.mxu0 %v4720_v47  ;;  %1933 = vmatmul.bf16.vlgmr.msra.gmra.mxu1 %v4724_v55  ;;  %v3503_v21 = vld [vmem:[#allocation5 + $0x568] sm:$0xf]  ;;  %v4324_v23 = vld [vmem:[#allocation5 + $0x574] sm:$0xf0]  ;;  %v3376_v28 = vor.u32 %v4292_v20, %v3375_v19  ;;  %v4242_v15 = vld [vmem:[#allocation5 + $0x2ec] sm:$0xf] }
  0xc1   :  { %1964 = vmatpush.bf16.msrb.mxu0 %v3440_v36  ;;  %1977 = vmatpush.bf16.msrb.mxu1 %v3568_v37  ;;  %v3631_v24 = vld [vmem:[#allocation5 + $0x668] sm:$0xf]  ;;  %v4356_v25 = vld [vmem:[#allocation5 + $0x674] sm:$0xf0]  ;;  %v3504_v29 = vor.u32 %v4324_v23, %v3503_v21  ;;  %v4274_v20 = vld [vmem:[#allocation5 + $0x3ec] sm:$0xf] }
  0xc2   :  { %1946 = vmatmul.bf16.vlgmr.msra.gmra.mxu2 %v4718_v46  ;;  %1959 = vmatmul.bf16.vlgmr.msra.gmra.mxu3 %v4722_v51  ;;  %v3759_v26 = vld [vmem:[#allocation5 + $0x768] sm:$0xf]  ;;  %v4388_v27 = vld [vmem:[#allocation5 + $0x774] sm:$0xf0]  ;;  %v3632_v30 = vor.u32 %v4356_v25, %v3631_v24  ;;  %v3313_v21 = vld [vmem:[#allocation5 + $0x3f8] sm:$0xf0] }
  0xc3   :  { %1990 = vmatpush.bf16.msrb.mxu2 %v3696_v38  ;;  %2003 = vmatpush.bf16.msrb.mxu3 %v3824_v42  ;;  %v3359_v31 = vld [vmem:[#allocation5 + $0x448] sm:$0xf]  ;;  %v4288_v32 = vld [vmem:[#allocation5 + $0x454] sm:$0xf0]  ;;  %v3760_v34 = vor.u32 %v4388_v27, %v3759_v26  ;;  %v3060_v26 = vor.u32 %v4210_v12, %v3057_v14  ;;  %v3265_v12 = vld [vmem:[#allocation5 + $0x398] sm:$0xf0] }
  0xc4   :  { %v3487_v33 = vld [vmem:[#allocation5 + $0x548] sm:$0xf]  ;;  %v4320_v35 = vld [vmem:[#allocation5 + $0x554] sm:$0xf0]  ;;  %v3360_v40 = vor.u32 %v4288_v32, %v3359_v31  ;;  %v3316_v32 = vor.u32 %v4274_v20, %v3313_v21  ;;  %v4194_v20 = vld [vmem:[#allocation5 + $0x16c] sm:$0xf] }
  0xc5   :  { %1965 = vmatpush.bf16.msrb.mxu0 %v3424_v52  ;;  %1978 = vmatpush.bf16.msrb.mxu1 %v3552_v53  ;;  %v3615_v36 = vld [vmem:[#allocation5 + $0x648] sm:$0xf]  ;;  %v4352_v37 = vld [vmem:[#allocation5 + $0x654] sm:$0xf0]  ;;  %v3488_v42 = vor.u32 %v4320_v35, %v3487_v33  ;;  %v3041_v33 = vld [vmem:[#allocation5 + $0x1d8] sm:$0xf0] }
  0xc6   :  { %v3743_v38 = vld [vmem:[#allocation5 + $0x748] sm:$0xf]  ;;  %v4384_v39 = vld [vmem:[#allocation5 + $0x754] sm:$0xf0]  ;;  %v3616_v43 = vor.u32 %v4352_v37, %v3615_v36  ;;  %v3169_v35 = vld [vmem:[#allocation5 + $0x2d8] sm:$0xf0] }
  0xc7   :  { %1991 = vmatpush.bf16.msrb.mxu2 %v3680_v56  ;;  %2004 = vmatpush.bf16.msrb.mxu3 %v3808_v62  ;;  %v3343_v41 = vld [vmem:[#allocation5 + $0x428] sm:$0xf]  ;;  %v4284_v45 = vld [vmem:[#allocation5 + $0x434] sm:$0xf0]  ;;  %v3744_v50 = vor.u32 %v4384_v39, %v3743_v38  ;;  %v4754_v56 = vld [vmem:[#allocation7] sm:$0xf] }
  0xc8   :  { %v3471_v48 = vld [vmem:[#allocation5 + $0x528] sm:$0xf]  ;;  %v4316_v49 = vld [vmem:[#allocation5 + $0x534] sm:$0xf0]  ;;  %v3344_v61 = vor.u32 %v4284_v45, %v3343_v41  ;;  %v4270_v36 = vld [vmem:[#allocation5 + $0x3cc] sm:$0xf] }
  0xc9   :  { %1966 = vmatpush.bf16.msrb.mxu0 %v3408_v4  ;;  %1979 = vmatpush.bf16.msrb.mxu1 %v3536_v5  ;;  %v3599_v52 = vld [vmem:[#allocation5 + $0x628] sm:$0xf]  ;;  %v4348_v53 = vld [vmem:[#allocation5 + $0x634] sm:$0xf0]  ;;  %v3472_v1 = vor.u32 %v4316_v49, %v3471_v48  ;;  %v416_v5 = vperm.slane %v4754_v56, 0 }
  0xca   :  { %v3727_v57 = vld [vmem:[#allocation5 + $0x728] sm:$0xf]  ;;  %v4380_v60 = vld [vmem:[#allocation5 + $0x734] sm:$0xf0]  ;;  %v3600_v2 = vor.u32 %v4348_v53, %v3599_v52  ;;  %v3297_v37 = vld [vmem:[#allocation5 + $0x3d8] sm:$0xf0] }
  0xcb   :  { %1992 = vmatpush.bf16.msrb.mxu2 %v3664_v6  ;;  %2005 = vmatpush.bf16.msrb.mxu3 %v3792_v10  ;;  %v3327_v62 = vld [vmem:[#allocation5 + $0x408] sm:$0xf]  ;;  %v4280_v63 = vld [vmem:[#allocation5 + $0x414] sm:$0xf0]  ;;  %v3728_v6 = vor.u32 %v4380_v60, %v3727_v57  ;;  %v4178_v10 = vld [vmem:[#allocation5 + $0xec] sm:$0xf] }
  0xcc   :  { %v3455_v0 = vld [vmem:[#allocation5 + $0x508] sm:$0xf]  ;;  %v4312_v3 = vld [vmem:[#allocation5 + $0x514] sm:$0xf0]  ;;  %v3328_v13 = vor.u32 %v4280_v63, %v3327_v62  ;;  %v2932_v25 = vor.u32 %v4178_v10, %v2929_v11  ;;  %v4170_v45 = vld [vmem:[#allocation5 + $0xac] sm:$0xf] }
  0xcd   :  { %1967 = vmatpush.bf16.msrb.mxu0 %v3392_v16  ;;  %1980 = vmatpush.bf16.msrb.mxu1 %v3520_v17  ;;  %v3583_v4 = vld [vmem:[#allocation5 + $0x608] sm:$0xf]  ;;  %v4344_v7 = vld [vmem:[#allocation5 + $0x614] sm:$0xf0]  ;;  %v3185_v16 = vld [vmem:[#allocation5 + $0x2f8] sm:$0xf0] }
  0xce   :  { %v3711_v8 = vld [vmem:[#allocation5 + $0x708] sm:$0xf]  ;;  %v4376_v9 = vld [vmem:[#allocation5 + $0x714] sm:$0xf0]  ;;  %v3584_v19 = vor.u32 %v4344_v7, %v3583_v4  ;;  %v3188_v27 = vor.u32 %v4242_v15, %v3185_v16  ;;  %v2897_v48 = vld [vmem:[#allocation5 + $0xb8] sm:$0xf0] }
  0xcf   :  { %1993 = vmatpush.bf16.msrb.mxu2 %v3648_v18  ;;  %2006 = vmatpush.bf16.msrb.mxu3 %v3776_v22  ;;  %v3456_v18 = vor.u32 %v4312_v3, %v3455_v0  ;;  %v3712_v24 = vor.u32 %v4376_v9, %v3711_v8  ;;  %v4202_v49 = vld [vmem:[#allocation5 + $0x1ac] sm:$0xf]  ;;  %v3025_v52 = vld [vmem:[#allocation5 + $0x1b8] sm:$0xf0] }
  0xd0   :  { %v4234_v53 = vld [vmem:[#allocation5 + $0x2ac] sm:$0xf]  ;;  %v3153_v57 = vld [vmem:[#allocation5 + $0x2b8] sm:$0xf0] }
  0xd1   :  { %1968 = vmatpush.bf16.msrb.mxu0 %v3376_v28  ;;  %1981 = vmatpush.bf16.msrb.mxu1 %v3504_v29  ;;  %v4174_v28 = vld [vmem:[#allocation5 + $0xcc] sm:$0xf]  ;;  %v2913_v29 = vld [vmem:[#allocation5 + $0xd8] sm:$0xf0]  ;;  %v3156_v3 = vor.u32 %v4234_v53, %v3153_v57 }
  0xd2   :  { %v2916_v39 = vor.u32 %v4174_v28, %v2913_v29  ;;  %v4266_v62 = vld [vmem:[#allocation5 + $0x3ac] sm:$0xf]  ;;  %v3281_v63 = vld [vmem:[#allocation5 + $0x3b8] sm:$0xf0] }
  0xd3   :  { %1994 = vmatpush.bf16.msrb.mxu2 %v3632_v30  ;;  %2007 = vmatpush.bf16.msrb.mxu3 %v3760_v34  ;;  %v1713_v17 = vpop.f32.mrf.mxu0  ;;  %v4206_v30 = vld [vmem:[#allocation5 + $0x1cc] sm:$0xf]  ;;  %v3284_v7 = vor.u32 %v4266_v62, %v3281_v63  ;;  %v3009_v8 = vld [vmem:[#allocation5 + $0x198] sm:$0xf0] }
  0xd4   :  { %v1714_v22 = vadd.f32 %v1713_v17, %v416_v5  ;;  %v4238_v34 = vld [vmem:[#allocation5 + $0x2cc] sm:$0xf]  ;;  %v2881_v5 = vld [vmem:[#allocation5 + $0x98] sm:$0xf0] }
  0xd5   :  { %1969 = vmatpush.bf16.msrb.mxu0 %v3360_v40  ;;  %1982 = vmatpush.bf16.msrb.mxu1 %v3488_v42  ;;  %v1726_v23 = vpop.f32.mrf.mxu1  ;;  %v3044_v42 = vor.u32 %v4206_v30, %v3041_v33  ;;  %v4166_v4 = vld [vmem:[#allocation5 + $0x8c] sm:$0xf]  ;;  %v3137_v10 = vld [vmem:[#allocation5 + $0x298] sm:$0xf0] }
  0xd6   :  { %v1727_v31 = vadd.f32 %v1726_v23, %v1714_v22  ;;  %v4230_v9 = vld [vmem:[#allocation5 + $0x28c] sm:$0xf]  ;;  %v2884_v14 = vor.u32 %v4166_v4, %v2881_v5  ;;  %v2993_v22 = vld [vmem:[#allocation5 + $0x178] sm:$0xf0] }
  0xd7   :  { %1995 = vmatpush.bf16.msrb.mxu2 %v3616_v43  ;;  %2008 = vmatpush.bf16.msrb.mxu3 %v3744_v50  ;;  %v3172_v43 = vor.u32 %v4238_v34, %v3169_v35  ;;  %v3300_v50 = vor.u32 %v4270_v36, %v3297_v37  ;;  %v4262_v11 = vld [vmem:[#allocation5 + $0x38c] sm:$0xf]  ;;  %v3140_v17 = vor.u32 %v4230_v9, %v3137_v10  ;;  %v2849_v34 = vld [vmem:[#allocation5 + $0x58] sm:$0xf0] }
  0xd8   :  { %v3268_v21 = vor.u32 %v4262_v11, %v3265_v12  ;;  %v4226_v23 = vld [vmem:[#allocation5 + $0x26c] sm:$0xf]  ;;  %v2977_v37 = vld [vmem:[#allocation5 + $0x158] sm:$0xf0] }
  0xd9   :  { %1970 = vmatpush.bf16.msrb.mxu0 %v3344_v61  ;;  %1983 = vmatpush.bf16.msrb.mxu1 %v3472_v1  ;;  %v1739_v38 = vpop.f32.mrf.mxu2  ;;  %v2900_v1 = vor.u32 %v4170_v45, %v2897_v48  ;;  %v4158_v33 = vld [vmem:[#allocation5 + $0x4c] sm:$0xf]  ;;  %v2833_v53 = vld [vmem:[#allocation5 + $0x38] sm:$0xf0] }
  0xda   :  { %v1740_v40 = vadd.f32 %v1739_v38, %v1727_v31  ;;  %v2996_v31 = vor.u32 %v4194_v20, %v2993_v22  ;;  %v4190_v35 = vld [vmem:[#allocation5 + $0x14c] sm:$0xf]  ;;  %v2852_v45 = vor.u32 %v4158_v33, %v2849_v34  ;;  %v3089_v63 = vld [vmem:[#allocation5 + $0x238] sm:$0xf0] }
  0xdb   :  { %1996 = vmatpush.bf16.msrb.mxu2 %v3600_v2  ;;  %2009 = vmatpush.bf16.msrb.mxu3 %v3728_v6  ;;  %v1752_v41 = vpop.f32.mrf.mxu3  ;;  %v1715_v61 = vpop.f32.mrf.mxu0  ;;  %v3028_v2 = vor.u32 %v4202_v49, %v3025_v52  ;;  %v4198_v6 = vld [vmem:[#allocation5 + $0x18c] sm:$0xf]  ;;  %v2980_v49 = vor.u32 %v4190_v35, %v2977_v37  ;;  %v2945_v12 = vld [vmem:[#allocation5 + $0x118] sm:$0xf0] }
  0xdc   :  { %v1753_v60 = vadd.f32 %v1752_v41, %v1740_v40  ;;  %v3012_v16 = vor.u32 %v4198_v6, %v3009_v8  ;;  %v4222_v38 = vld [vmem:[#allocation5 + $0x24c] sm:$0xf]  ;;  %v2961_v61 = vld [vmem:[#allocation5 + $0x138] sm:$0xf0] }
  0xdd   :  { %1971 = vmatpush.bf16.msrb.mxu0 %v3328_v13  ;;  %1984 = vmatpush.bf16.msrb.mxu1 %v3456_v18  ;;  %v1728_v0 = vpop.f32.mrf.mxu1  ;;  %v4162_v18 = vld [vmem:[#allocation5 + $0x6c] sm:$0xf] }
  0xde   :  { %v4254_v41 = vld [vmem:[#allocation5 + $0x34c] sm:$0xf] }
  0xdf   :  { %1997 = vmatpush.bf16.msrb.mxu2 %v3584_v19  ;;  %2010 = vmatpush.bf16.msrb.mxu3 %v3712_v24  ;;  %v2865_v19 = vld [vmem:[#allocation5 + $0x78] sm:$0xf0]  ;;  %v4154_v52 = vld [vmem:[#allocation5 + $0x2c] sm:$0xf] }
  0xe0   :  { %1972 = vmatmul.bf16.vlgmr.msrb.gmra.mxu0 %v4732_v54  ;;  %1985 = vmatmul.bf16.vlgmr.msrb.gmra.mxu1 %v4736_v59  ;;  %v3121_v24 = vld [vmem:[#allocation5 + $0x278] sm:$0xf0]  ;;  %v2868_v28 = vor.u32 %v4162_v18, %v2865_v19  ;;  %v4186_v57 = vld [vmem:[#allocation5 + $0x12c] sm:$0xf]  ;;  %v2836_v5 = vor.u32 %v4154_v52, %v2833_v53 }
  0xe1   :  { %2016 = vmatpush.bf16.msra.mxu0 %v2932_v25  ;;  %2029 = vmatpush.bf16.msra.mxu1 %v3060_v26  ;;  %v1741_v13 = vpop.f32.mrf.mxu2  ;;  %v4258_v25 = vld [vmem:[#allocation5 + $0x36c] sm:$0xf]  ;;  %v3249_v26 = vld [vmem:[#allocation5 + $0x378] sm:$0xf0]  ;;  %v2964_v9 = vor.u32 %v4186_v57, %v2961_v61 }
  0xe2   :  { %1998 = vmatmul.bf16.vlgmr.msrb.gmra.mxu2 %v4730_v44  ;;  %2011 = vmatmul.bf16.vlgmr.msrb.gmra.mxu3 %v4734_v58  ;;  %v3252_v36 = vor.u32 %v4258_v25, %v3249_v26  ;;  %v4218_v62 = vld [vmem:[#allocation5 + $0x22c] sm:$0xf]  ;;  %v3441_v19 = vld [vmem:[#allocation5 + $0x4f8] sm:$0xf0] }
  0xe3   :  { %2042 = vmatpush.bf16.msra.mxu2 %v3188_v27  ;;  %2055 = vmatpush.bf16.msra.mxu3 %v3316_v32  ;;  %v1754_v15 = vpop.f32.mrf.mxu3  ;;  %v1765_v27 = vpop.f32.mrf.mxu0  ;;  %v3124_v32 = vor.u32 %v4226_v23, %v3121_v24  ;;  %v4150_v6 = vld [vmem:[#allocation5 + $0xc] sm:$0xf]  ;;  %v3092_v10 = vor.u32 %v4218_v62, %v3089_v63  ;;  %v3569_v23 = vld [vmem:[#allocation5 + $0x5f8] sm:$0xf0] }
  0xe4   :  { %v1766_v29 = vadd.f32 %v1765_v27, %v1753_v60  ;;  %v4182_v11 = vld [vmem:[#allocation5 + $0x10c] sm:$0xf]  ;;  %v3073_v15 = vld [vmem:[#allocation5 + $0x218] sm:$0xf0] }
  0xe5   :  { %2017 = vmatpush.bf16.msra.mxu0 %v2916_v39  ;;  %2030 = vmatpush.bf16.msra.mxu1 %v3044_v42  ;;  %v1778_v30 = vpop.f32.mrf.mxu1  ;;  %v3105_v39 = vld [vmem:[#allocation5 + $0x258] sm:$0xf0]  ;;  %v4214_v13 = vld [vmem:[#allocation5 + $0x20c] sm:$0xf]  ;;  %v2948_v26 = vor.u32 %v4182_v11, %v2945_v12 }
  0xe6   :  { %v1779_v40 = vadd.f32 %v1778_v30, %v1766_v29  ;;  %v3233_v42 = vld [vmem:[#allocation5 + $0x358] sm:$0xf0]  ;;  %v4306_v18 = vld [vmem:[#allocation5 + $0x4ec] sm:$0xf]  ;;  %v3076_v27 = vor.u32 %v4214_v13, %v3073_v15 }
  0xe7   :  { %2043 = vmatpush.bf16.msra.mxu2 %v3172_v43  ;;  %2056 = vmatpush.bf16.msra.mxu3 %v3300_v50  ;;  %v3108_v50 = vor.u32 %v4222_v38, %v3105_v39  ;;  %v3236_v60 = vor.u32 %v4254_v41, %v3233_v42  ;;  %v4338_v20 = vld [vmem:[#allocation5 + $0x5ec] sm:$0xf]  ;;  %v3697_v25 = vld [vmem:[#allocation5 + $0x6f8] sm:$0xf0] }
  0xe8   :  { %v4370_v24 = vld [vmem:[#allocation5 + $0x6ec] sm:$0xf]  ;;  %v3825_v29 = vld [vmem:[#allocation5 + $0x7f8] sm:$0xf0]  ;;  %v3572_v33 = vor.u32 %v4338_v20, %v3569_v23 }
  0xe9   :  { %2018 = vmatpush.bf16.msra.mxu0 %v2900_v1  ;;  %2031 = vmatpush.bf16.msra.mxu1 %v3028_v2  ;;  %v1791_v43 = vpop.f32.mrf.mxu2  ;;  %v4250_v1 = vld [vmem:[#allocation5 + $0x32c] sm:$0xf]  ;;  %v3217_v2 = vld [vmem:[#allocation5 + $0x338] sm:$0xf0]  ;;  %v3700_v34 = vor.u32 %v4370_v24, %v3697_v25 }
  0xea   :  { %v1792_v48 = vadd.f32 %v1791_v43, %v1779_v40  ;;  %v4302_v35 = vld [vmem:[#allocation5 + $0x4cc] sm:$0xf]  ;;  %v3553_v39 = vld [vmem:[#allocation5 + $0x5d8] sm:$0xf0] }
  0xeb   :  { %2044 = vmatpush.bf16.msra.mxu2 %v3156_v3  ;;  %2057 = vmatpush.bf16.msra.mxu3 %v3284_v7  ;;  %v1804_v0 = vpop.f32.mrf.mxu3  ;;  %v1767_v4 = vpop.f32.mrf.mxu0  ;;  %v2817_v7 = vld [vmem:[#allocation5 + $0x18] sm:$0xf0]  ;;  %v4334_v37 = vld [vmem:[#allocation5 + $0x5cc] sm:$0xf] }
  0xec   :  { %v4761_v3 = vadd.f32 %v1804_v0, %v1792_v48  ;;  %v2820_v22 = vor.u32 %v4150_v6, %v2817_v7  ;;  %v4366_v40 = vld [vmem:[#allocation5 + $0x6cc] sm:$0xf]  ;;  %v3681_v41 = vld [vmem:[#allocation5 + $0x6d8] sm:$0xf0]  ;;  %v3556_v48 = vor.u32 %v4334_v37, %v3553_v39 }
  0xed   :  { %2019 = vmatpush.bf16.msra.mxu0 %v2884_v14  ;;  %2032 = vmatpush.bf16.msra.mxu1 %v3012_v16  ;;  %v1780_v8 = vpop.f32.mrf.mxu1  ;;  %v3220_v14 = vor.u32 %v4250_v1, %v3217_v2  ;;  %v4246_v16 = vld [vmem:[#allocation5 + $0x30c] sm:$0xf]  ;;  %v3809_v43 = vld [vmem:[#allocation5 + $0x7d8] sm:$0xf0] }
  0xee   :  { %v4398_v42 = vld [vmem:[#allocation5 + $0x7cc] sm:$0xf]  ;;  %v3409_v52 = vld [vmem:[#allocation5 + $0x4b8] sm:$0xf0] }
  0xef   :  { %2045 = vmatpush.bf16.msra.mxu2 %v3140_v17  ;;  %2058 = vmatpush.bf16.msra.mxu3 %v3268_v21  ;;  %v3201_v17 = vld [vmem:[#allocation5 + $0x318] sm:$0xf0]  ;;  %v4330_v53 = vld [vmem:[#allocation5 + $0x5ac] sm:$0xf]  ;;  %v3812_v57 = vor.u32 %v4398_v42, %v3809_v43 }
  0xf0   :  { %v3204_v30 = vor.u32 %v4246_v16, %v3201_v17  ;;  %v4362_v61 = vld [vmem:[#allocation5 + $0x6ac] sm:$0xf]  ;;  %v3665_v62 = vld [vmem:[#allocation5 + $0x6b8] sm:$0xf0] }
  0xf1   :  { %2020 = vmatpush.bf16.msra.mxu0 %v2868_v28  ;;  %2033 = vmatpush.bf16.msra.mxu1 %v2996_v31  ;;  %v1793_v21 = vpop.f32.mrf.mxu2  ;;  %v4402_v28 = vld [vmem:[#allocation5 + $0x7ec] sm:$0xf]  ;;  %v3444_v31 = vor.u32 %v4306_v18, %v3441_v19  ;;  %v3793_v0 = vld [vmem:[#allocation5 + $0x7b8] sm:$0xf0]  ;;  %v3668_v4 = vor.u32 %v4362_v61, %v3665_v62  ;;  %v417_v61 = vperm.slane %v4754_v56, 1 }
  0xf2   :  { %v3828_v38 = vor.u32 %v4402_v28, %v3825_v29  ;;  %v4394_v63 = vld [vmem:[#allocation5 + $0x7ac] sm:$0xf]  ;;  %v3393_v6 = vld [vmem:[#allocation5 + $0x498] sm:$0xf0] }
  0xf3   :  { %2046 = vmatpush.bf16.msra.mxu2 %v3124_v32  ;;  %2059 = vmatpush.bf16.msra.mxu3 %v3252_v36  ;;  %v1806_v32 = vpop.f32.mrf.mxu3  ;;  %v3425_v36 = vld [vmem:[#allocation5 + $0x4d8] sm:$0xf0]  ;;  %v3796_v7 = vor.u32 %v4394_v63, %v3793_v0  ;;  %v4390_v11 = vld [vmem:[#allocation5 + $0x78c] sm:$0xf] }
  0xf4   :  { %v3521_v8 = vld [vmem:[#allocation5 + $0x598] sm:$0xf0]  ;;  %v4322_v16 = vld [vmem:[#allocation5 + $0x56c] sm:$0xf] }
  0xf5   :  { %2021 = vmatpush.bf16.msra.mxu0 %v2852_v45  ;;  %2034 = vmatpush.bf16.msra.mxu1 %v2980_v49  ;;  %v3428_v45 = vor.u32 %v4302_v35, %v3425_v36  ;;  %v3684_v49 = vor.u32 %v4366_v40, %v3681_v41  ;;  %v3377_v15 = vld [vmem:[#allocation5 + $0x478] sm:$0xf0]  ;;  %v4354_v20 = vld [vmem:[#allocation5 + $0x66c] sm:$0xf] }
  0xf6   :  { %v3505_v19 = vld [vmem:[#allocation5 + $0x578] sm:$0xf0]  ;;  %v4318_v29 = vld [vmem:[#allocation5 + $0x54c] sm:$0xf] }
  0xf7   :  { %2047 = vmatpush.bf16.msra.mxu2 %v3108_v50  ;;  %2060 = vmatpush.bf16.msra.mxu3 %v3236_v60  ;;  %v4298_v50 = vld [vmem:[#allocation5 + $0x4ac] sm:$0xf]  ;;  %v3537_v60 = vld [vmem:[#allocation5 + $0x5b8] sm:$0xf0]  ;;  %v3508_v25 = vor.u32 %v4322_v16, %v3505_v19 }
  0xf8   :  { %v3412_v1 = vor.u32 %v4298_v50, %v3409_v52  ;;  %v3540_v2 = vor.u32 %v4330_v53, %v3537_v60  ;;  %v3633_v21 = vld [vmem:[#allocation5 + $0x678] sm:$0xf0]  ;;  %v4382_v36 = vld [vmem:[#allocation5 + $0x74c] sm:$0xf] }
  0xf9   :  { %2022 = vmatpush.bf16.msra.mxu0 %v2836_v5  ;;  %2035 = vmatpush.bf16.msra.mxu1 %v2964_v9  ;;  %v4294_v5 = vld [vmem:[#allocation5 + $0x48c] sm:$0xf]  ;;  %v3761_v23 = vld [vmem:[#allocation5 + $0x778] sm:$0xf0] }
  0xfa   :  { %v4358_v9 = vld [vmem:[#allocation5 + $0x68c] sm:$0xf]  ;;  %v3361_v28 = vld [vmem:[#allocation5 + $0x458] sm:$0xf0] }
  0xfb   :  { %2048 = vmatpush.bf16.msra.mxu2 %v3092_v10  ;;  %2061 = vmatpush.bf16.msra.mxu3 %v3220_v14  ;;  %v3649_v10 = vld [vmem:[#allocation5 + $0x698] sm:$0xf0]  ;;  %v4290_v14 = vld [vmem:[#allocation5 + $0x46c] sm:$0xf] }
  0xfc   :  { %v3652_v13 = vor.u32 %v4358_v9, %v3649_v10  ;;  %v3380_v24 = vor.u32 %v4290_v14, %v3377_v15  ;;  %v3489_v32 = vld [vmem:[#allocation5 + $0x558] sm:$0xf0]  ;;  %v4282_v42 = vld [vmem:[#allocation5 + $0x42c] sm:$0xf] }
  0xfd   :  { %2023 = vmatpush.bf16.msra.mxu0 %v2820_v22  ;;  %2036 = vmatpush.bf16.msra.mxu1 %v2948_v26  ;;  %v4767_v12 = vpop.f32.mrf.mxu0  ;;  %v4769_v17 = vpop.f32.mrf.mxu1  ;;  %v4386_v22 = vld [vmem:[#allocation5 + $0x76c] sm:$0xf]  ;;  %v3636_v26 = vor.u32 %v4354_v20, %v3633_v21  ;;  %v3745_v37 = vld [vmem:[#allocation5 + $0x758] sm:$0xf0]  ;;  %v3492_v40 = vor.u32 %v4318_v29, %v3489_v32 }
  0xfe   :  { %v3345_v43 = vld [vmem:[#allocation5 + $0x438] sm:$0xf0]  ;;  %v4346_v52 = vld [vmem:[#allocation5 + $0x62c] sm:$0xf] }
  0xff   :  { %2049 = vmatpush.bf16.msra.mxu2 %v3076_v27  ;;  %2062 = vmatpush.bf16.msra.mxu3 %v3204_v30  ;;  %v4286_v27 = vld [vmem:[#allocation5 + $0x44c] sm:$0xf]  ;;  %v3473_v50 = vld [vmem:[#allocation5 + $0x538] sm:$0xf0]  ;;  %v3348_v62 = vor.u32 %v4282_v42, %v3345_v43  ;;  %v3855_v42 = vld [vmem:[#allocation8 + $0x30] sm:$0xf] }
 0x100   :  { %2024 = vmatmul.bf16.vlgmr.msra.gmra.mxu0 %v4720_v47  ;;  %2037 = vmatmul.bf16.vlgmr.msra.gmra.mxu1 %v4724_v55  ;;  %v3777_v47 = vld [vmem:[#allocation5 + $0x798] sm:$0xf0]  ;;  %v4278_v63 = vld [vmem:[#allocation5 + $0x40c] sm:$0xf]  ;;  %v3919_v43 = vld [vmem:[#allocation8 + $0xb0] sm:$0xf] }
 0x101   :  { %2068 = vmatpush.bf16.msrb.mxu0 %v3444_v31  ;;  %2081 = vmatpush.bf16.msrb.mxu1 %v3572_v33  ;;  %v3780_v18 = vor.u32 %v4390_v11, %v3777_v47  ;;  %v3764_v31 = vor.u32 %v4386_v22, %v3761_v23  ;;  %v4350_v33 = vld [vmem:[#allocation5 + $0x64c] sm:$0xf]  ;;  %v3601_v53 = vld [vmem:[#allocation5 + $0x638] sm:$0xf0]  ;;  %v3887_v47 = vld [vmem:[#allocation8 + $0x70] sm:$0xf] }
 0x102   :  { %2050 = vmatmul.bf16.vlgmr.msra.gmra.mxu2 %v4718_v46  ;;  %2063 = vmatmul.bf16.vlgmr.msra.gmra.mxu3 %v4722_v51  ;;  %v4326_v46 = vld [vmem:[#allocation5 + $0x58c] sm:$0xf]  ;;  %v3396_v51 = vor.u32 %v4294_v5, %v3393_v6  ;;  %v3729_v60 = vld [vmem:[#allocation5 + $0x738] sm:$0xf0]  ;;  %v3879_v22 = vld [vmem:[#allocation8 + $0x60] sm:$0xf] }
 0x103   :  { %2094 = vmatpush.bf16.msrb.mxu2 %v3700_v34  ;;  %2107 = vmatpush.bf16.msrb.mxu3 %v3828_v38  ;;  %v3524_v55 = vor.u32 %v4326_v46, %v3521_v8  ;;  %v3617_v34 = vld [vmem:[#allocation5 + $0x658] sm:$0xf0]  ;;  %v3364_v38 = vor.u32 %v4286_v27, %v3361_v28  ;;  %v4374_v9 = vld [vmem:[#allocation5 + $0x70c] sm:$0xf]  ;;  %v3871_v28 = vld [vmem:[#allocation8 + $0x50] sm:$0xf] }
 0x104   :  { %v3620_v41 = vor.u32 %v4350_v33, %v3617_v34  ;;  %v3457_v5 = vld [vmem:[#allocation5 + $0x518] sm:$0xf0]  ;;  %v4418_v23 = vld [vmem:[#allocation8 + $0x64] sm:$0xf0] }
 0x105   :  { %2069 = vmatpush.bf16.msrb.mxu0 %v3428_v45  ;;  %2082 = vmatpush.bf16.msrb.mxu1 %v3556_v48  ;;  %v4771_v30 = vpop.f32.mrf.mxu2  ;;  %v4773_v35 = vpop.f32.mrf.mxu3  ;;  %v4314_v45 = vld [vmem:[#allocation5 + $0x52c] sm:$0xf]  ;;  %v3585_v8 = vld [vmem:[#allocation5 + $0x618] sm:$0xf0] }
 0x106   :  { %v1819_v39 = vpop.f32.mrf.mxu0  ;;  %v1832_v48 = vpop.f32.mrf.mxu1  ;;  %v3476_v0 = vor.u32 %v4314_v45, %v3473_v50  ;;  %v3713_v11 = vld [vmem:[#allocation5 + $0x718] sm:$0xf0]  ;;  %v4450_v50 = vld [vmem:[#allocation8 + $0x164] sm:$0xf0] }
 0x107   :  { %2095 = vmatpush.bf16.msrb.mxu2 %v3684_v49  ;;  %2108 = vmatpush.bf16.msrb.mxu3 %v3812_v57  ;;  %v3748_v49 = vor.u32 %v4382_v36, %v3745_v37  ;;  %v4378_v57 = vld [vmem:[#allocation5 + $0x72c] sm:$0xf]  ;;  %v4420_v56 = vld [vmem:[#allocation8 + $0x74] sm:$0xf0]  ;;  %v3927_v37 = vld [vmem:[#allocation8 + $0xc0] sm:$0xf] }
 0x108   :  { %v3732_v46 = vor.u32 %v4378_v57, %v3729_v60  ;;  %v4436_v14 = vld [vmem:[#allocation8 + $0xf4] sm:$0xf0]  ;;  %v3888_v19 = vor.u32 %v4420_v56, %v3887_v47  ;;  %v4414_v36 = vld [vmem:[#allocation8 + $0x44] sm:$0xf0]  ;;  %v3903_v47 = vld [vmem:[#allocation8 + $0x90] sm:$0xf] }
 0x109   :  { %2070 = vmatpush.bf16.msrb.mxu0 %v3412_v1  ;;  %2083 = vmatpush.bf16.msrb.mxu1 %v3540_v2  ;;  %v3604_v1 = vor.u32 %v4346_v52, %v3601_v53  ;;  %v3329_v2 = vld [vmem:[#allocation5 + $0x418] sm:$0xf0] }
 0x10a   :  { %v4416_v29 = vld [vmem:[#allocation8 + $0x54] sm:$0xf0] }
 0x10b   :  { %2096 = vmatpush.bf16.msrb.mxu2 %v3668_v4  ;;  %2109 = vmatpush.bf16.msrb.mxu3 %v3796_v7  ;;  %v4310_v4 = vld [vmem:[#allocation5 + $0x50c] sm:$0xf]  ;;  %v3872_v32 = vor.u32 %v4416_v29, %v3871_v28  ;;  %v4452_v39 = vld [vmem:[#allocation8 + $0x174] sm:$0xf0]  ;;  %v4435_v28 = vld [vmem:[#allocation8 + $0xf4] sm:$0xf] }
 0x10c   :  { %v4342_v7 = vld [vmem:[#allocation5 + $0x60c] sm:$0xf]  ;;  %v3460_v15 = vor.u32 %v4310_v4, %v3457_v5  ;;  %v3999_v4 = vld [vmem:[#allocation8 + $0x150] sm:$0xf]  ;;  %v4448_v5 = vld [vmem:[#allocation8 + $0x154] sm:$0xf0] }
 0x10d   :  { %2071 = vmatpush.bf16.msrb.mxu0 %v3396_v51  ;;  %2084 = vmatpush.bf16.msrb.mxu1 %v3524_v55  ;;  %v1845_v6 = vpop.f32.mrf.mxu2  ;;  %v1858_v10 = vpop.f32.mrf.mxu3  ;;  %v1818_v51 = vadd.f32 %v4767_v12, %v417_v61  ;;  %v3332_v55 = vor.u32 %v4278_v63, %v3329_v2  ;;  %v3588_v16 = vor.u32 %v4342_v7, %v3585_v8  ;;  %v3847_v61 = vld [vmem:[#allocation8 + $0x20] sm:$0xf]  ;;  %v3953_v29 = vld [vmem:[#allocation8 + $0xf8] sm:$0xf0] }
 0x10e   :  { %v3880_v12 = vor.u32 %v4418_v23, %v3879_v22  ;;  %v3911_v63 = vld [vmem:[#allocation8 + $0xa0] sm:$0xf]  ;;  %v4000_v6 = vor.u32 %v4448_v5, %v3999_v4  ;;  %v3839_v10 = vld [vmem:[#allocation8 + $0x10] sm:$0xf]  ;;  %v4422_v22 = vld [vmem:[#allocation8 + $0x84] sm:$0xf0] }
 0x10f   :  { %2097 = vmatpush.bf16.msrb.mxu2 %v3652_v13  ;;  %2110 = vmatpush.bf16.msrb.mxu3 %v3780_v18  ;;  %v3951_v13 = vld [vmem:[#allocation8 + $0xf0] sm:$0xf]  ;;  %v3716_v18 = vor.u32 %v4374_v9, %v3713_v11  ;;  %v1831_v21 = vadd.f32 %v4769_v17, %v1818_v51  ;;  %v4408_v11 = vld [vmem:[#allocation8 + $0x14] sm:$0xf0]  ;;  %v4419_v23 = vld [vmem:[#allocation8 + $0x74] sm:$0xf] }
 0x110   :  { %v3952_v20 = vor.u32 %v4436_v14, %v3951_v13  ;;  %v3935_v17 = vld [vmem:[#allocation8 + $0xd0] sm:$0xf]  ;;  %v4424_v51 = vld [vmem:[#allocation8 + $0x94] sm:$0xf0]  ;;  %v4446_v13 = vld [vmem:[#allocation8 + $0x144] sm:$0xf0] }
 0x111   :  { %2072 = vmatpush.bf16.msrb.mxu0 %v3380_v24  ;;  %2085 = vmatpush.bf16.msrb.mxu1 %v3508_v25  ;;  %v3943_v24 = vld [vmem:[#allocation8 + $0xe0] sm:$0xf]  ;;  %v4434_v25 = vld [vmem:[#allocation8 + $0xe4] sm:$0xf0]  ;;  %v1844_v27 = vadd.f32 %v4771_v30, %v1831_v21  ;;  %v4429_v4 = vld [vmem:[#allocation8 + $0xc4] sm:$0xf] }
 0x112   :  { %v4430_v30 = vld [vmem:[#allocation8 + $0xc4] sm:$0xf0]  ;;  %v3895_v21 = vld [vmem:[#allocation8 + $0x80] sm:$0xf]  ;;  %v3929_v5 = vld [vmem:[#allocation8 + $0xc8] sm:$0xf0] }
 0x113   :  { %2098 = vmatpush.bf16.msrb.mxu2 %v3636_v26  ;;  %2111 = vmatpush.bf16.msrb.mxu3 %v3764_v31  ;;  %v3944_v26 = vor.u32 %v4434_v25, %v3943_v24  ;;  %v4432_v31 = vld [vmem:[#allocation8 + $0xd4] sm:$0xf0]  ;;  %v1857_v33 = vadd.f32 %v4773_v35, %v1844_v27  ;;  %v3889_v25 = vld [vmem:[#allocation8 + $0x78] sm:$0xf0] }
 0x114   :  { %v3936_v34 = vor.u32 %v4432_v31, %v3935_v17  ;;  %v4428_v35 = vld [vmem:[#allocation8 + $0xb4] sm:$0xf0] }
 0x115   :  { %2073 = vmatpush.bf16.msrb.mxu0 %v3364_v38  ;;  %2086 = vmatpush.bf16.msrb.mxu1 %v3492_v40  ;;  %v4015_v38 = vld [vmem:[#allocation8 + $0x170] sm:$0xf]  ;;  %v3920_v60 = vor.u32 %v4428_v35, %v3919_v43  ;;  %v4444_v27 = vld [vmem:[#allocation8 + $0x134] sm:$0xf0]  ;;  %v3873_v35 = vld [vmem:[#allocation8 + $0x58] sm:$0xf0] }
 0x116   :  { %v4016_v40 = vor.u32 %v4452_v39, %v4015_v38  ;;  %v3975_v38 = vld [vmem:[#allocation8 + $0x120] sm:$0xf]  ;;  %v4442_v39 = vld [vmem:[#allocation8 + $0x124] sm:$0xf0]  ;;  %v4440_v43 = vld [vmem:[#allocation8 + $0x114] sm:$0xf0] }
 0x117   :  { %2099 = vmatpush.bf16.msrb.mxu2 %v3620_v41  ;;  %2112 = vmatpush.bf16.msrb.mxu3 %v3748_v49  ;;  %v3928_v41 = vor.u32 %v4430_v30, %v3927_v37  ;;  %v4007_v49 = vld [vmem:[#allocation8 + $0x160] sm:$0xf]  ;;  %v3956_v37 = vor.u32 %v4435_v28, %v3953_v29  ;;  %v3881_v30 = vld [vmem:[#allocation8 + $0x68] sm:$0xf0]  ;;  %v3841_v28 = vld [vmem:[#allocation8 + $0x18] sm:$0xf0] }
 0x118   :  { %v4008_v52 = vor.u32 %v4450_v50, %v4007_v49  ;;  %v4431_v49 = vld [vmem:[#allocation8 + $0xd4] sm:$0xf] }
 0x119   :  { %2074 = vmatpush.bf16.msrb.mxu0 %v3348_v62  ;;  %2087 = vmatpush.bf16.msrb.mxu1 %v3476_v0  ;;  %v4410_v62 = vld [vmem:[#allocation8 + $0x24] sm:$0xf0]  ;;  %v4423_v29 = vld [vmem:[#allocation8 + $0x94] sm:$0xf] }
 0x11b   :  { %2100 = vmatpush.bf16.msrb.mxu2 %v3604_v1  ;;  %2113 = vmatpush.bf16.msrb.mxu3 %v3732_v46  ;;  %v4426_v1 = vld [vmem:[#allocation8 + $0xa4] sm:$0xf0]  ;;  %v3848_v46 = vor.u32 %v4410_v62, %v3847_v61  ;;  %v4017_v61 = vld [vmem:[#allocation8 + $0x178] sm:$0xf0] }
 0x11c   :  { %v3912_v9 = vor.u32 %v4426_v1, %v3911_v63  ;;  %v3865_v1 = vld [vmem:[#allocation8 + $0x48] sm:$0xf0] }
 0x11d   :  { %2075 = vmatpush.bf16.msrb.mxu0 %v3332_v55  ;;  %2088 = vmatpush.bf16.msrb.mxu1 %v3460_v15  ;;  %v1882_v48 = vpop.f32.mrf.mxu1  ;;  %v3991_v55 = vld [vmem:[#allocation8 + $0x140] sm:$0xf] }
 0x11e   :  { %v3992_v14 = vor.u32 %v4446_v13, %v3991_v55  ;;  %v4009_v55 = vld [vmem:[#allocation8 + $0x168] sm:$0xf0] }
 0x11f   :  { %2101 = vmatpush.bf16.msrb.mxu2 %v3588_v16  ;;  %2114 = vmatpush.bf16.msrb.mxu3 %v3716_v18  ;;  %v3840_v16 = vor.u32 %v4408_v11, %v3839_v10  ;;  %v3831_v18 = vld [vmem:[#allocation8] sm:$0xf]  ;;  %v4427_v10 = vld [vmem:[#allocation8 + $0xb4] sm:$0xf] }
 0x120   :  { %2076 = vmatmul.bf16.vlgmr.msrb.gmra.mxu0 %v4732_v54  ;;  %2089 = vmatmul.bf16.vlgmr.msrb.gmra.mxu1 %v4736_v59  ;;  %v3863_v54 = vld [vmem:[#allocation8 + $0x40] sm:$0xf] }
 0x121   :  { %2518 = vmatpush.bf16.msra.mxu0 %v3888_v19  ;;  %2531 = vmatpush.bf16.msra.mxu1 %v3952_v20  ;;  %v3864_v59 = vor.u32 %v4414_v36, %v3863_v54  ;;  %v4406_v19 = vld [vmem:[#allocation8 + $0x4] sm:$0xf0]  ;;  %v3904_v20 = vor.u32 %v4424_v51, %v3903_v47  ;;  %v3892_v54 = vor.u32 %v4419_v23, %v3889_v25  ;;  %v4417_v36 = vld [vmem:[#allocation8 + $0x64] sm:$0xf]  ;;  %v3921_v47 = vld [vmem:[#allocation8 + $0xb8] sm:$0xf0] }
 0x122   :  { %2102 = vmatmul.bf16.vlgmr.msrb.gmra.mxu2 %v4730_v44  ;;  %2115 = vmatmul.bf16.vlgmr.msrb.gmra.mxu3 %v4734_v58  ;;  %v1869_v44 = vpop.f32.mrf.mxu0  ;;  %v4412_v58 = vld [vmem:[#allocation8 + $0x34] sm:$0xf0]  ;;  %v4449_v51 = vld [vmem:[#allocation8 + $0x164] sm:$0xf]  ;;  %v4001_v23 = vld [vmem:[#allocation8 + $0x158] sm:$0xf0] }
 0x123   :  { %v1870_v45 = vadd.f32 %v1869_v44, %v1857_v33  ;;  %2544 = vmatpush.bf16.msra.mxu2 %v4016_v40  ;;  %v3856_v53 = vor.u32 %v4412_v58, %v3855_v42  ;;  %v2120_v33 = vmax.f32 %v4761_v3, 0.0  ;;  %v4433_v40 = vld [vmem:[#allocation8 + $0xe4] sm:$0xf]  ;;  %v3976_v44 = vor.u32 %v4442_v39, %v3975_v38  ;;  %v3967_v58 = vld [vmem:[#allocation8 + $0x110] sm:$0xf] }
 0x124   :  { %v3884_v3 = vor.u32 %v4417_v36, %v3881_v30  ;;  %v3968_v50 = vor.u32 %v4440_v43, %v3967_v58  ;;  %v4012_v13 = vor.u32 %v4449_v51, %v4009_v55  ;;  %v4405_v38 = vld [vmem:[#allocation8 + $0x4] sm:$0xf]  ;;  %v3897_v58 = vld [vmem:[#allocation8 + $0x88] sm:$0xf0] }
 0x125   :  { %2519 = vmatpush.bf16.msra.mxu0 %v3880_v12  ;;  %2532 = vmatpush.bf16.msra.mxu1 %v3944_v26  ;;  %v1883_v57 = vadd.f32 %v1882_v48, %v1870_v45  ;;  %v1895_v0 = vpop.f32.mrf.mxu2  ;;  %v1908_v2 = vpop.f32.mrf.mxu3  ;;  %v3983_v26 = vld [vmem:[#allocation8 + $0x130] sm:$0xf]  ;;  %v4787_v42 = vpack.c.bf16 %v2120_v33, %v2120_v33  ;;  %v4415_v48 = vld [vmem:[#allocation8 + $0x54] sm:$0xf]  ;;  %v4445_v33 = vld [vmem:[#allocation8 + $0x144] sm:$0xf] }
 0x126   :  { %v1884_v56 = vpop.f32.mrf.mxu1  ;;  %v3984_v17 = vor.u32 %v4444_v27, %v3983_v26  ;;  %v3876_v62 = vor.u32 %v4415_v48, %v3873_v35  ;;  %v4407_v27 = vld [vmem:[#allocation8 + $0x14] sm:$0xf]  ;;  %v4441_v35 = vld [vmem:[#allocation8 + $0x124] sm:$0xf] }
 0x127   :  { %2545 = vmatpush.bf16.msra.mxu2 %v4008_v52  ;;  %v1896_v7 = vadd.f32 %v1895_v0, %v1883_v57  ;;  %v3937_v52 = vld [vmem:[#allocation8 + $0xd8] sm:$0xf0]  ;;  %v4438_v57 = vld [vmem:[#allocation8 + $0x104] sm:$0xf0]  ;;  %v4413_v0 = vld [vmem:[#allocation8 + $0x44] sm:$0xf]  ;;  %v3844_v36 = vor.u32 %v4407_v27, %v3841_v28 }
 0x128   :  { %v3940_v63 = vor.u32 %v4431_v49, %v3937_v52  ;;  %v3977_v49 = vld [vmem:[#allocation8 + $0x128] sm:$0xf0]  ;;  %v4458_v27 = vld [vmem:[#allocation8 + $0x1a4] sm:$0xf0] }
 0x129   :  { %2520 = vmatpush.bf16.msra.mxu0 %v3872_v32  ;;  %2533 = vmatpush.bf16.msra.mxu1 %v3936_v34  ;;  %v1909_v15 = vadd.f32 %v1908_v2, %v1896_v7  ;;  %v3832_v32 = vor.u32 %v4406_v19, %v3831_v18  ;;  %v3896_v34 = vor.u32 %v4422_v22, %v3895_v21  ;;  %v3849_v18 = vld [vmem:[#allocation8 + $0x28] sm:$0xf0]  ;;  %v4425_v19 = vld [vmem:[#allocation8 + $0xa4] sm:$0xf]  ;;  %v4447_v22 = vld [vmem:[#allocation8 + $0x154] sm:$0xf] }
 0x12a   :  { %v1871_v8 = vpop.f32.mrf.mxu0  ;;  %v3932_v7 = vor.u32 %v4429_v4, %v3929_v5  ;;  %v4004_v25 = vor.u32 %v4447_v22, %v4001_v23  ;;  %v4437_v4 = vld [vmem:[#allocation8 + $0x104] sm:$0xf]  ;;  %v3961_v5 = vld [vmem:[#allocation8 + $0x108] sm:$0xf0] }
 0x12b   :  { %2546 = vmatpush.bf16.msra.mxu2 %v4000_v6  ;;  %v2121_v31 = vmax.f32 %v1909_v15, 0.0  ;;  %v4411_v8 = vld [vmem:[#allocation8 + $0x34] sm:$0xf]  ;;  %v3924_v15 = vor.u32 %v4427_v10, %v3921_v47  ;;  %v4464_v47 = vld [vmem:[#allocation8 + $0x1d4] sm:$0xf0] }
 0x12d   :  { %2521 = vmatpush.bf16.msra.mxu0 %v3864_v59  ;;  %2534 = vmatpush.bf16.msra.mxu1 %v3928_v41  ;;  %v1897_v24 = vpop.f32.mrf.mxu2  ;;  %v1910_v12 = vpop.f32.mrf.mxu3  ;;  %v3945_v59 = vld [vmem:[#allocation8 + $0xe8] sm:$0xf0]  ;;  %v4785_v41 = vpack.c.bf16 %v2121_v31, %v2121_v31  ;;  %v3905_v31 = vld [vmem:[#allocation8 + $0x98] sm:$0xf0] }
 0x12e   :  { %v3948_v45 = vor.u32 %v4433_v40, %v3945_v59  ;;  %v3908_v39 = vor.u32 %v4423_v29, %v3905_v31  ;;  %v3833_v40 = vld [vmem:[#allocation8 + $0x8] sm:$0xf0]  ;;  %v4443_v59 = vld [vmem:[#allocation8 + $0x134] sm:$0xf] }
 0x12f   :  { %2547 = vmatpush.bf16.msra.mxu2 %v3992_v14 }
 0x131   :  { %2522 = vmatpush.bf16.msra.mxu0 %v3856_v53  ;;  %2535 = vmatpush.bf16.msra.mxu1 %v3920_v60  ;;  %v3959_v53 = vld [vmem:[#allocation8 + $0x100] sm:$0xf]  ;;  %v4451_v60 = vld [vmem:[#allocation8 + $0x174] sm:$0xf] }
 0x132   :  { %v3960_v2 = vor.u32 %v4438_v57, %v3959_v53  ;;  %v4020_v6 = vor.u32 %v4451_v60, %v4017_v61  ;;  %v3836_v53 = vor.u32 %v4405_v38, %v3833_v40  ;;  %v4468_v57 = vld [vmem:[#allocation8 + $0x1f4] sm:$0xf0]  ;;  %v4467_v38 = vld [vmem:[#allocation8 + $0x1f4] sm:$0xf] }
 0x133   :  { %2548 = vmatpush.bf16.msra.mxu2 %v3984_v17 }
 0x135   :  { %2523 = vmatpush.bf16.msra.mxu0 %v3848_v46  ;;  %2536 = vmatpush.bf16.msra.mxu1 %v3912_v9  ;;  %v3868_v46 = vor.u32 %v4413_v0, %v3865_v1  ;;  %v3857_v9 = vld [vmem:[#allocation8 + $0x38] sm:$0xf0] }
 0x136   :  { %v3860_v14 = vor.u32 %v4411_v8, %v3857_v9  ;;  %v3969_v0 = vld [vmem:[#allocation8 + $0x118] sm:$0xf0]  ;;  %v4071_v8 = vld [vmem:[#allocation8 + $0x1e0] sm:$0xf]  ;;  %v4466_v9 = vld [vmem:[#allocation8 + $0x1e4] sm:$0xf0] }
 0x137   :  { %2549 = vmatpush.bf16.msra.mxu2 %v3976_v44  ;;  %v3985_v44 = vld [vmem:[#allocation8 + $0x138] sm:$0xf0]  ;;  %v4072_v10 = vor.u32 %v4466_v9, %v4071_v8 }
 0x138   :  { %v4033_v8 = vld [vmem:[#allocation8 + $0x198] sm:$0xf0] }
 0x139   :  { %2524 = vmatpush.bf16.msra.mxu0 %v3840_v16  ;;  %2537 = vmatpush.bf16.msra.mxu1 %v3904_v20  ;;  %v4409_v16 = vld [vmem:[#allocation8 + $0x24] sm:$0xf]  ;;  %v3913_v20 = vld [vmem:[#allocation8 + $0xa8] sm:$0xf0] }
 0x13a   :  { %v3852_v12 = vor.u32 %v4409_v16, %v3849_v18  ;;  %v3916_v26 = vor.u32 %v4425_v19, %v3913_v20  ;;  %v4047_v20 = vld [vmem:[#allocation8 + $0x1b0] sm:$0xf] }
 0x13b   :  { %2550 = vmatpush.bf16.msra.mxu2 %v3968_v50  ;;  %v4079_v50 = vld [vmem:[#allocation8 + $0x1f0] sm:$0xf] }
 0x13c   :  { %v4080_v61 = vor.u32 %v4468_v57, %v4079_v50 }
 0x13d   :  { %2525 = vmatpush.bf16.msra.mxu0 %v3832_v32  ;;  %2538 = vmatpush.bf16.msra.mxu1 %v3896_v34  ;;  %v1921_v11 = vpop.f32.mrf.mxu0  ;;  %v4791_v56 = vpop.f32.mrf.mxu1  ;;  %v3993_v34 = vld [vmem:[#allocation8 + $0x148] sm:$0xf0] }
 0x13e   :  { %2557 = vmatpush.bf16.msra.mxu3 %v4080_v61 }
 0x13f   :  { %2551 = vmatpush.bf16.msra.mxu2 %v3960_v2 }
 0x140   :  { %2526 = vmatmul.bf16.vlgmr.msra.gmra.mxu0 %v4787_v42  ;;  %2539 = vmatmul.bf16.vlgmr.msra.gmra.mxu1 %v4785_v41 }
 0x141   :  { %2570 = vmatpush.bf16.msrb.mxu0 %v3892_v54  ;;  %2583 = vmatpush.bf16.msrb.mxu1 %v3956_v37  ;;  %v3996_v54 = vor.u32 %v4445_v33, %v3993_v34  ;;  %v4793_v37 = vld [vmem:[#allocation7] sm:$0xf]  ;;  %v4456_v33 = vld [vmem:[#allocation8 + $0x194] sm:$0xf0] }
 0x142   :  { %v418_v30 = vperm.slane %v4793_v37, 2  ;;  %2558 = vmatpush.bf16.msra.mxu3 %v4072_v10 }
 0x143   :  { %2596 = vmatpush.bf16.msrb.mxu2 %v4020_v6 }
 0x144   :  { %v1922_v52 = vadd.f32 %v1921_v11, %v418_v30  ;;  %v4063_v11 = vld [vmem:[#allocation8 + $0x1d0] sm:$0xf] }
 0x145   :  { %2571 = vmatpush.bf16.msrb.mxu0 %v3884_v3  ;;  %2584 = vmatpush.bf16.msrb.mxu1 %v3948_v45  ;;  %v1947_v21 = vpop.f32.mrf.mxu2  ;;  %v1960_v24 = vpop.f32.mrf.mxu3  ;;  %v4421_v3 = vld [vmem:[#allocation8 + $0x84] sm:$0xf]  ;;  %v3988_v45 = vor.u32 %v4443_v59, %v3985_v44  ;;  %v4073_v44 = vld [vmem:[#allocation8 + $0x1e8] sm:$0xf0] }
 0x146   :  { %v1923_v17 = vpop.f32.mrf.mxu0  ;;  %v1936_v32 = vpop.f32.mrf.mxu1  ;;  %v3900_v60 = vor.u32 %v4421_v3, %v3897_v58  ;;  %v1935_v1 = vadd.f32 %v4791_v56, %v1922_v52  ;;  %v4465_v59 = vld [vmem:[#allocation8 + $0x1e4] sm:$0xf] }
 0x147   :  { %2597 = vmatpush.bf16.msrb.mxu2 %v4012_v13  ;;  %v4064_v13 = vor.u32 %v4464_v47, %v4063_v11  ;;  %v4031_v32 = vld [vmem:[#allocation8 + $0x190] sm:$0xf]  ;;  %v4076_v58 = vor.u32 %v4465_v59, %v4073_v44  ;;  %v4461_v52 = vld [vmem:[#allocation8 + $0x1c4] sm:$0xf]  ;;  %v4025_v47 = vld [vmem:[#allocation8 + $0x188] sm:$0xf0] }
 0x148   :  { %v1948_v6 = vadd.f32 %v1947_v21, %v1935_v1  ;;  %v4460_v21 = vld [vmem:[#allocation8 + $0x1b4] sm:$0xf0]  ;;  %v4032_v34 = vor.u32 %v4456_v33, %v4031_v32  ;;  %v4453_v11 = vld [vmem:[#allocation8 + $0x184] sm:$0xf]  ;;  %v4475_v44 = vld [vmem:[#allocation10 + $0x30] sm:$0xff] }
 0x149   :  { %2572 = vmatpush.bf16.msrb.mxu0 %v3876_v62  ;;  %2585 = vmatpush.bf16.msrb.mxu1 %v3940_v63  ;;  %v3980_v62 = vor.u32 %v4441_v35, %v3977_v49  ;;  %v4439_v63 = vld [vmem:[#allocation8 + $0x114] sm:$0xf]  ;;  %v4484_v59 = vld [vmem:[#allocation10 + $0x78] sm:$0xff] }
 0x14a   :  { %v3972_v2 = vor.u32 %v4439_v63, %v3969_v0  ;;  %2559 = vmatpush.bf16.msra.mxu3 %v4064_v13  ;;  %v4049_v63 = vld [vmem:[#allocation8 + $0x1b8] sm:$0xf0]  ;;  %v419_v0 = vperm.slane %v4793_v37, 3 }
 0x14b   :  { %2598 = vmatpush.bf16.msrb.mxu2 %v4004_v25  ;;  %v4048_v25 = vor.u32 %v4460_v21, %v4047_v20 }
 0x14d   :  { %2573 = vmatpush.bf16.msrb.mxu0 %v3868_v46  ;;  %2586 = vmatpush.bf16.msrb.mxu1 %v3932_v7  ;;  %v1949_v43 = vpop.f32.mrf.mxu2  ;;  %v1962_v48 = vpop.f32.mrf.mxu3  ;;  %v3964_v46 = vor.u32 %v4437_v4, %v3961_v5  ;;  %v1961_v7 = vadd.f32 %v1960_v24, %v1948_v6  ;;  %v4041_v4 = vld [vmem:[#allocation8 + $0x1a8] sm:$0xf0] }
 0x14e   :  { %v4065_v48 = vld [vmem:[#allocation8 + $0x1d8] sm:$0xf0] }
 0x14f   :  { %2599 = vmatpush.bf16.msrb.mxu2 %v3996_v54  ;;  %v4023_v54 = vld [vmem:[#allocation8 + $0x180] sm:$0xf] }
 0x151   :  { %2574 = vmatpush.bf16.msrb.mxu0 %v3860_v14  ;;  %2587 = vmatpush.bf16.msrb.mxu1 %v3924_v15  ;;  %v4055_v14 = vld [vmem:[#allocation8 + $0x1c0] sm:$0xf]  ;;  %v4462_v15 = vld [vmem:[#allocation8 + $0x1c4] sm:$0xf0] }
 0x153   :  { %2600 = vmatpush.bf16.msrb.mxu2 %v3988_v45  ;;  %v4463_v45 = vld [vmem:[#allocation8 + $0x1d4] sm:$0xf] }
 0x154   :  { %v4068_v35 = vor.u32 %v4463_v45, %v4065_v48  ;;  %v4473_v45 = vld [vmem:[#allocation10 + $0x20] sm:$0xff]  ;;  %v4472_v48 = vld [vmem:[#allocation10 + $0x18] sm:$0xff] }
 0x155   :  { %2575 = vmatpush.bf16.msrb.mxu0 %v3852_v12  ;;  %2588 = vmatpush.bf16.msrb.mxu1 %v3916_v26  ;;  %v4039_v26 = vld [vmem:[#allocation8 + $0x1a0] sm:$0xf] }
 0x156   :  { %v4040_v17 = vor.u32 %v4458_v27, %v4039_v26 }
 0x157   :  { %2601 = vmatpush.bf16.msrb.mxu2 %v3980_v62  ;;  %v4459_v62 = vld [vmem:[#allocation8 + $0x1b4] sm:$0xf] }
 0x158   :  { %v4052_v1 = vor.u32 %v4459_v62, %v4049_v63  ;;  %v4480_v62 = vld [vmem:[#allocation10 + $0x58] sm:$0xff]  ;;  %v4479_v63 = vld [vmem:[#allocation10 + $0x50] sm:$0xff] }
 0x159   :  { %2576 = vmatpush.bf16.msrb.mxu0 %v3844_v36  ;;  %2589 = vmatpush.bf16.msrb.mxu1 %v3908_v39  ;;  %v4454_v36 = vld [vmem:[#allocation8 + $0x184] sm:$0xf0]  ;;  %v4081_v39 = vld [vmem:[#allocation8 + $0x1f8] sm:$0xf0] }
 0x15a   :  { %v4024_v30 = vor.u32 %v4454_v36, %v4023_v54  ;;  %v4084_v40 = vor.u32 %v4467_v38, %v4081_v39 }
 0x15b   :  { %2602 = vmatpush.bf16.msrb.mxu2 %v3972_v2  ;;  %v4457_v2 = vld [vmem:[#allocation8 + $0x1a4] sm:$0xf] }
 0x15d   :  { %2577 = vmatpush.bf16.msrb.mxu0 %v3836_v53  ;;  %2590 = vmatpush.bf16.msrb.mxu1 %v3900_v60  ;;  %v1973_v56 = vpop.f32.mrf.mxu0  ;;  %v1986_v55 = vpop.f32.mrf.mxu1  ;;  %v4057_v53 = vld [vmem:[#allocation8 + $0x1c8] sm:$0xf0] }
 0x15e   :  { %v1974_v51 = vadd.f32 %v1973_v56, %v1961_v7  ;;  %v4060_v60 = vor.u32 %v4461_v52, %v4057_v53  ;;  %v4455_v7 = vld [vmem:[#allocation8 + $0x194] sm:$0xf]  ;;  %v4470_v53 = vld [vmem:[#allocation10 + $0x8] sm:$0xff] }
 0x15f   :  { %2603 = vmatpush.bf16.msrb.mxu2 %v3964_v46  ;;  %v4044_v46 = vor.u32 %v4457_v2, %v4041_v4  ;;  %v4036_v10 = vor.u32 %v4455_v7, %v4033_v8 }
 0x160   :  { %2578 = vmatmul.bf16.vlgmr.msrb.gmra.mxu0 %v4787_v42  ;;  %2591 = vmatmul.bf16.vlgmr.msrb.gmra.mxu1 %v4785_v41  ;;  %v1987_v42 = vadd.f32 %v1986_v55, %v1974_v51  ;;  %v4056_v41 = vor.u32 %v4462_v15, %v4055_v14  ;;  %v4028_v51 = vor.u32 %v4453_v11, %v4025_v47 }
 0x161   :  { %2771 = vmatpush.bf16.msra.mxu1 %v4484_v59 }
 0x162   :  { %2560 = vmatpush.bf16.msra.mxu3 %v4056_v41 }
 0x165   :  { %v1999_v16 = vpop.f32.mrf.mxu2  ;;  %v2012_v19 = vpop.f32.mrf.mxu3 }
 0x166   :  { %v2000_v18 = vadd.f32 %v1999_v16, %v1987_v42  ;;  %v1975_v23 = vpop.f32.mrf.mxu0  ;;  %v1988_v24 = vpop.f32.mrf.mxu1  ;;  %2561 = vmatpush.bf16.msra.mxu3 %v4048_v25 }
 0x168   :  { %v2013_v22 = vadd.f32 %v2012_v19, %v2000_v18 }
 0x16a   :  { %v2122_v12 = vmax.f32 %v2013_v22, 0.0  ;;  %2562 = vmatpush.bf16.msra.mxu3 %v4040_v17 }
 0x16c   :  { %v2126_v28 = vpack.c.bf16 %v2122_v12, %v2122_v12  ;;  %v2192_v12 = vld [vmem:[%s4813_s4] sm:$0x3] }
 0x16d   :  { %v2001_v29 = vpop.f32.mrf.mxu2  ;;  %v2014_v31 = vpop.f32.mrf.mxu3  ;;  %v2194_v26 = vperm.slane %v2192_v12, 0  ;;  %v2195_v33 = vperm.slane %v2192_v12, 1 }
 0x16e   :  { %2552 = vmatmul.bf16.vlgmr.msra.gmra.mxu2 %v2126_v28  ;;  %2563 = vmatpush.bf16.msra.mxu3 %v4032_v34 }
 0x172   :  { %2564 = vmatpush.bf16.msra.mxu3 %v4024_v30 }
 0x176   :  { %2609 = vmatpush.bf16.msrb.mxu3 %v4084_v40  ;;  %v4476_v40 = vld [vmem:[#allocation10 + $0x38] sm:$0xff] }
 0x177   :  { %2758 = vmatpush.bf16.msra.mxu0 %v4476_v40 }
 0x17a   :  { %2610 = vmatpush.bf16.msrb.mxu3 %v4076_v58  ;;  %v4474_v58 = vld [vmem:[#allocation10 + $0x28] sm:$0xff] }
 0x17b   :  { %2759 = vmatpush.bf16.msra.mxu0 %v4475_v44 }
 0x17d   :  { %v2025_v3 = vpop.f32.mrf.mxu0  ;;  %v2038_v43 = vpop.f32.mrf.mxu1 }
 0x17e   :  { %2604 = vmatmul.bf16.vlgmr.msrb.gmra.mxu2 %v2126_v28  ;;  %2611 = vmatpush.bf16.msrb.mxu3 %v4068_v35  ;;  %v2026_v9 = vadd.f32 %v2025_v3, %v419_v0  ;;  %v4483_v3 = vld [vmem:[#allocation10 + $0x70] sm:$0xff]  ;;  %v4478_v0 = vld [vmem:[#allocation10 + $0x48] sm:$0xff] }
 0x17f   :  { %2772 = vmatpush.bf16.msra.mxu1 %v4483_v3  ;;  %2760 = vmatpush.bf16.msra.mxu0 %v4474_v58 }
 0x180   :  { %v2039_v56 = vadd.f32 %v2038_v43, %v2026_v9 }
 0x182   :  { %2612 = vmatpush.bf16.msrb.mxu3 %v4060_v60  ;;  %v4469_v60 = vld [vmem:[#allocation10] sm:$0xff] }
 0x183   :  { %2761 = vmatpush.bf16.msra.mxu0 %v4473_v45 }
 0x185   :  { %v2051_v49 = vpop.f32.mrf.mxu2  ;;  %v2064_v50 = vpop.f32.mrf.mxu3 }
 0x186   :  { %v2027_v57 = vpop.f32.mrf.mxu0  ;;  %v2040_v61 = vpop.f32.mrf.mxu1  ;;  %2613 = vmatpush.bf16.msrb.mxu3 %v4052_v1  ;;  %v2052_v55 = vadd.f32 %v2051_v49, %v2039_v56  ;;  %v4471_v49 = vld [vmem:[#allocation10 + $0x10] sm:$0xff]  ;;  %v4477_v1 = vld [vmem:[#allocation10 + $0x40] sm:$0xff] }
 0x187   :  { %2762 = vmatpush.bf16.msra.mxu0 %v4472_v48  ;;  %v4482_v57 = vld [vmem:[#allocation10 + $0x68] sm:$0xff]  ;;  %v4481_v61 = vld [vmem:[#allocation10 + $0x60] sm:$0xff] }
 0x188   :  { %v2065_v37 = vadd.f32 %v2064_v50, %v2052_v55  ;;  %2773 = vmatpush.bf16.msra.mxu1 %v4482_v57 }
 0x18a   :  { %2614 = vmatpush.bf16.msrb.mxu3 %v4044_v46 }
 0x18b   :  { %2763 = vmatpush.bf16.msra.mxu0 %v4471_v49 }
 0x18c   :  { %2774 = vmatpush.bf16.msra.mxu1 %v4481_v61 }
 0x18d   :  { %v2053_v5 = vpop.f32.mrf.mxu2  ;;  %v2066_v6 = vpop.f32.mrf.mxu3 }
 0x18e   :  { %2615 = vmatpush.bf16.msrb.mxu3 %v4036_v10 }
 0x18f   :  { %2764 = vmatpush.bf16.msra.mxu0 %v4470_v53 }
 0x190   :  { %2775 = vmatpush.bf16.msra.mxu1 %v4480_v62 }
 0x192   :  { %2616 = vmatpush.bf16.msrb.mxu3 %v4028_v51 }
 0x193   :  { %2765 = vmatpush.bf16.msra.mxu0 %v4469_v60 }
 0x194   :  { %2776 = vmatpush.bf16.msra.mxu1 %v4479_v63 }
 0x198   :  { %2777 = vmatpush.bf16.msra.mxu1 %v4478_v0 }
 0x19c   :  { %2778 = vmatpush.bf16.msra.mxu1 %v4477_v1 }
 0x19d   :  { %v2077_v13 = vpop.f32.mrf.mxu0  ;;  %v2090_v42 = vpop.f32.mrf.mxu1 }
 0x19e   :  { %v2078_v14 = vadd.f32 %v2077_v13, %v2065_v37  ;;  %v4497_v37 = vld [vmem:[%s4815_s6] ss:$0 sm:$0xff] }
 0x1a0   :  { %v2091_v15 = vadd.f32 %v2090_v42, %v2078_v14 }
 0x1a5   :  { %v2103_v16 = vpop.f32.mrf.mxu2  ;;  %v2116_v18 = vpop.f32.mrf.mxu3 }
 0x1a6   :  { %v2104_v41 = vadd.f32 %v2103_v16, %v2091_v15  ;;  %v2079_v19 = vpop.f32.mrf.mxu0  ;;  %v2092_v20 = vpop.f32.mrf.mxu1 }
 0x1a8   :  { %v2117_v21 = vadd.f32 %v2116_v18, %v2104_v41 }
 0x1aa   :  { %v2123_v22 = vmax.f32 %v2117_v21, 0.0 }
 0x1ac   :  { %v2127_v23 = vpack.c.bf16 %v2123_v22, %v2123_v22 }
 0x1ad   :  { %v2105_v24 = vpop.f32.mrf.mxu2  ;;  %v2118_v25 = vpop.f32.mrf.mxu3 }
 0x1ae   :  { %2565 = vmatmul.bf16.vlgmr.msra.gmra.mxu3 %v2127_v23 }
 0x1bd   :  { %v2527_v27 = vpop.f32.mrf.mxu0  ;;  %v2540_v29 = vpop.f32.mrf.mxu1 }
 0x1be   :  { %v2528_v28 = vadd.f32 %v2527_v27, %v2194_v26  ;;  %2617 = vmatmul.bf16.vlgmr.msrb.gmra.mxu3 %v2127_v23 }
 0x1c0   :  { %v2541_v17 = vadd.f32 %v2540_v29, %v2528_v28 }
 0x1c5   :  { %v2529_v31 = vpop.f32.mrf.mxu0  ;;  %v2542_v32 = vpop.f32.mrf.mxu1 }
 0x1dd   :  { %v2579_v34 = vpop.f32.mrf.mxu0  ;;  %v2592_v36 = vpop.f32.mrf.mxu1 }
 0x1de   :  { %v2580_v54 = vadd.f32 %v2579_v34, %v2195_v33 }
 0x1e0   :  { %v2593_v30 = vadd.f32 %v2592_v36, %v2580_v54 }
 0x1e5   :  { %v2581_v38 = vpop.f32.mrf.mxu0  ;;  %v2594_v39 = vpop.f32.mrf.mxu1 }
 0x1f1   :  { %v2553_v43 = vpop.f32.mrf.mxu2 }
 0x1f2   :  { %v2554_v2 = vadd.f32 %v2553_v43, %v2541_v17 }
 0x1f9   :  { %v2555_v35 = vpop.f32.mrf.mxu2 }
 0x201   :  { %v2605_v50 = vpop.f32.mrf.mxu2 }
 0x202   :  { %v2606_v8 = vadd.f32 %v2605_v50, %v2593_v30 }
 0x209   :  { %v2607_v52 = vpop.f32.mrf.mxu2 }
 0x231   :  { %v2566_v4 = vpop.f32.mrf.mxu3 }
 0x232   :  { %v2567_v5 = vadd.f32 %v2566_v4, %v2554_v2 }
 0x234   :  { %v2622_v6 = vmax.f32 %v2567_v5, 0.0 }
 0x236   :  { %v2624_v46 = vpack.c.bf16 %v2622_v6, %v2622_v6 }
 0x238   :  { %2766 = vmatmul.bf16.vlgmr.msra.gmra.mxu0 %v2624_v46 }
 0x239   :  { %v2568_v7 = vpop.f32.mrf.mxu3 }
 0x241   :  { %v2618_v9 = vpop.f32.mrf.mxu3 }
 0x242   :  { %v2619_v10 = vadd.f32 %v2618_v9, %v2606_v8 }
 0x244   :  { %v2623_v11 = vmax.f32 %v2619_v10, 0.0 }
 0x246   :  { %v2625_v47 = vpack.c.bf16 %v2623_v11, %v2623_v11 }
 0x248   :  { %2779 = vmatmul.bf16.vlgmr.msra.gmra.mxu1 %v2625_v47 }
 0x249   :  { %v2620_v56 = vpop.f32.mrf.mxu3 }
 0x2b5   :  { %v2767_v51 = vpop.f32.mrf.mxu0 }
 0x2b6   :  { %v2768_v13 = vadd.f32 %v4497_v37, %v2767_v51 }
 0x2bd   :  { %v2769_v55 = vpop.f32.mrf.mxu0 }
 0x2c5   :  { %v2780_v42 = vpop.f32.mrf.mxu1 }
 0x2c6   :  { %v2781_v14 = vadd.f32 %v2780_v42, %v2768_v13 }
 0x2c8   :  { %v2784_v15 = vpack.c.bf16 %v2781_v14, %v2781_v14 }
 0x2ca   :  { %2785 = vst [vmem:[#allocation11] sm:$0xf] %v2784_v15 }
 0x2cb   :  { %2796 = dma.vmem_to_hbm [thread:$0]  %s2792_s8, 64, %s2794_s11, [#allocation4]  }
 0x2cd   :  { %v2782_v16 = vpop.f32.mrf.mxu1 }
 0x2ce   :  { %4649 = dma.done.wait [#allocation4], 64  }
 0x2cf   :  { %4650 = vsyncadd [#allocation4], 4294967232 }
 0x2d0   :  { %2801 = vsyncpa [#allocation3], 1 }
 0x2d1   :  { %2802 = vsyncpa [#allocation6], 1 }
 0x2d2   :  { %2803 = vsyncpa [#allocation9], 1 }
 0x2d3   :  { %2804 = vsyncpa [#allocation4], 1 }

</bundles_post_ra>
